<compile_context>
chip_gen: v5e
topology: v5e:2x2
jax: 0.10.0
libtpu: 0.0.40
codegen_flags: <defaults>
</compile_context>

<pallas_src>
import functools

import jax
import jax.numpy as jnp
from jax.experimental import pallas as pl
from jax.experimental.pallas import tpu as pltpu

_ALIGN = 16  # channel padding: aligned for f32 (8) and bf16 (16) sublane tiles


def _round_up(x, m):
    return (x + m - 1) // m * m


# ----------------------------------------------------------------------------- #
# Wrapper-side constants (built once, plain XLA)
# ----------------------------------------------------------------------------- #
def _make_tap_masks(H, W):
    """(9, H*W) f32 lane-validity masks for the 9 taps of a 3x3 pad-1 conv
    (kh-major order).  Integer row/col math (no f32 floor)."""
    hw = H * W
    pos = jnp.arange(hw, dtype=jnp.int32)
    row = pos // W
    col = pos - row * W
    rows = []
    for dh in (-1, 0, 1):
        for dw in (-1, 0, 1):
            m = jnp.ones((hw,), jnp.bool_)
            if dh == -1:
                m = m & (row >= 1)
            elif dh == 1:
                m = m & (row < H - 1)
            if dw == -1:
                m = m & (col >= 1)
            elif dw == 1:
                m = m & (col < W - 1)
            rows.append(m)
    return jnp.stack(rows, axis=0).astype(jnp.float32)


def _pack_conv_weight(w_hwio, cin_pad, cout_pad):
    """(3,3,Cin,Cout) HWIO -> (cout_pad, 9*cin_pad) bf16, tap-major then Cin."""
    _, _, cin, cout = w_hwio.shape
    wp = jnp.zeros((3, 3, cin_pad, cout_pad), jnp.float32)
    wp = wp.at[:, :, :cin, :cout].set(w_hwio.astype(jnp.float32))
    wp = jnp.transpose(wp.reshape(9, cin_pad, cout_pad), (2, 0, 1))
    return wp.reshape(cout_pad, 9 * cin_pad).astype(jnp.bfloat16)


def _pad_bias(b, cout_pad):
    return jnp.zeros((cout_pad, 1), jnp.float32).at[: b.shape[0], 0].set(
        b.astype(jnp.float32))


def pack_attention_normalization_params(params):
    """Build matmul-ready packed weights ONCE (call outside the jitted forward)."""
    dc, hc = params["w1"].shape[2], params["w1"].shape[3]
    xc = params["wa"].shape[3]
    xcp, dcp, hcp = (_round_up(c, _ALIGN) for c in (xc, dc, hc))
    return {
        "w1": _pack_conv_weight(params["w1"], dcp, hcp),        # (hcp, 9*dcp)
        "b1": _pad_bias(params["b1"], hcp),
        "wab": jnp.concatenate([_pack_conv_weight(params["wa"], hcp, xcp),
                                _pack_conv_weight(params["wb"], hcp, xcp)], axis=0),
        "bab": jnp.concatenate([_pad_bias(params["ba"], xcp),
                                _pad_bias(params["bb"], xcp)], axis=0),
        "w3": _pack_conv_weight(params["w3"], xcp, xcp),        # (xcp, 9*xcp)
        "b3": _pad_bias(params["b3"], xcp),
    }


# ----------------------------------------------------------------------------- #
# In-kernel helpers
# ----------------------------------------------------------------------------- #
def _conv3x3(x, w_ref, b_ref, masks_ref, pack_ref, cinp, H, W):
    """3x3 same-padding conv, channel-major, one MXU matmul.

    x:        (cinp, H*W) f32, cinp % 16 == 0 (padded rows are zero)
    w_ref:    (Cout, 9*cinp) bf16 packed weights
    b_ref:    (Cout, 1) f32
    pack_ref: (>=9*cinp, H*W) bf16 shared scratch (overwritten)
    ->        (Cout, H*W) f32
    """
    hw = H * W
    k = 0
    for dh in (-1, 0, 1):
        for dw in (-1, 0, 1):
            off = dh * W + dw
            t = x if off == 0 else pltpu.roll(x, (-off) % hw, 1)
            if not (dh == 0 and dw == 0):                 # center tap always valid
                t = t * masks_ref[k:k + 1, :]
            pack_ref[k * cinp:(k + 1) * cinp, :] = t.astype(pack_ref.dtype)
            k += 1
    return (jnp.dot(w_ref[...], pack_ref[0:9 * cinp, :],
                    preferred_element_type=jnp.float32) + b_ref[...])


# ----------------------------------------------------------------------------- #
# Fused kernel:  grid = (phase, N)
# ----------------------------------------------------------------------------- #
def _fused_kernel(x_ref, d_ref, masks_ref, w1_ref, b1_ref, wab_ref, bab_ref,
                  w3_ref, b3_ref, out_ref, sum_ref, sq_ref, pack_ref,
                  *, H, W, xcp, dcp, hcp, inv_count, eps):
    phase = pl.program_id(0)
    n = pl.program_id(1)

    # ---- phase 0: BatchNorm2d(affine=False) batch statistics -----------------
    @pl.when(phase == 0)
    def _stats():
        @pl.when(n == 0)
        def _():
            sum_ref[...] = jnp.zeros_like(sum_ref)
            sq_ref[...] = jnp.zeros_like(sq_ref)

        x = x_ref[0]                                            # (xcp, H*W)
        sum_ref[...] += jnp.sum(x, axis=1, keepdims=True)
        sq_ref[...] += jnp.sum(x * x, axis=1, keepdims=True)

        @pl.when(n == pl.num_programs(1) - 1)
        def _():
            mean = sum_ref[...] * inv_count
            # TODO(synk): E[x^2]-mean^2 can cancel for very large-mean inputs; a
            # 3-phase centered pass would be more robust at one extra x read.
            var = jnp.maximum(sq_ref[...] * inv_count - mean * mean, 0.0)
            sum_ref[...] = mean                                 # reuse as mean
            sq_ref[...] = jax.lax.rsqrt(var + eps)              # reuse as inv_std

    # ---- phase 1: normalize + conv1 + modulation + conv3 ---------------------
    @pl.when(phase == 1)
    def _compute():
        mean = sum_ref[...]
        inv_std = sq_ref[...]
        xx = (x_ref[0] - mean) * inv_std                        # (xcp, H*W) f32

        dd = _conv3x3(d_ref[0], w1_ref, b1_ref, masks_ref, pack_ref, dcp, H, W)
        dd = jnp.maximum(dd, 0.0)                               # (hcp, H*W)

        ab = _conv3x3(dd, wab_ref, bab_ref, masks_ref, pack_ref, hcp, H, W)
        alpha = jax.nn.sigmoid(ab[0:xcp, :])
        beta = ab[xcp:, :]
        mod = jnp.maximum(xx * alpha + beta, 0.0)               # (xcp, H*W)

        y = _conv3x3(mod, w3_ref, b3_ref, masks_ref, pack_ref, xcp, H, W)

        out_ref[0, 0:xcp, :] = xx.astype(out_ref.dtype)         # 16-aligned stores
        out_ref[0, xcp:, :] = y.astype(out_ref.dtype)


# ----------------------------------------------------------------------------- #
# Forward wrapper
# ----------------------------------------------------------------------------- #
def attention_normalization_forward(x_nchw, d_nchw, packed):
    """Inputs / outputs in PyTorch NCHW; internals channel-major (C, H*W)."""
    n, xc, h, w = x_nchw.shape
    dc = d_nchw.shape[1]
    hw = h * w
    xcp = packed["w3"].shape[0]
    hcp = packed["w1"].shape[0]
    dcp = packed["w1"].shape[1] // 9
    max_cinp = max(dcp, hcp, xcp)

    # Channel-major, channel-padded activations (reshape + pad; no transpose).
    x_cm = jnp.pad(x_nchw.reshape(n, xc, hw).astype(jnp.float32),
                   ((0, 0), (0, xcp - xc), (0, 0)))
    d_cm = jnp.pad(d_nchw.reshape(n, dc, hw).astype(jnp.float32),
                   ((0, 0), (0, dcp - dc), (0, 0)))
    masks = _make_tap_masks(h, w)                               # (9, hw) f32 const

    # ---- advisory cost estimate & explicit VMEM budget ----------------------
    flops = 2 * n * hw * (hcp * 9 * dcp + 2 * xcp * 9 * hcp + xcp * 9 * xcp)
    wgt_bytes = (2 * 9 * (hcp * dcp + 2 * xcp * hcp + xcp * xcp)
                 + 4 * (hcp + 3 * xcp) + 4 * 9 * hw)
    bytes_accessed = 4 * hw * n * (2 * xcp + dcp + 2 * xcp) + wgt_bytes
    act_bytes = 4 * hw * (xcp + dcp + 2 * xcp)                  # x + d + out blocks
    scratch_bytes = 2 * 9 * max_cinp * hw + 8 * xcp
    temp_bytes = 4 * hw * (5 * xcp + 2 * hcp)                   # xx, ab, mod, dd, ...
    vmem_limit = int(min(48 * 1024 * 1024,
                         max(16 * 1024 * 1024,
                             2 * (act_bytes + wgt_bytes) + scratch_bytes
                             + 2 * temp_bytes + (2 << 20))))

    out_p = pl.pallas_call(
        functools.partial(_fused_kernel, H=h, W=w, xcp=xcp, dcp=dcp, hcp=hcp,
                          inv_count=1.0 / (n * hw), eps=1e-5),
        out_shape=jax.ShapeDtypeStruct((n, 2 * xcp, hw), jnp.float32),
        grid=(2, n),                                            # (phase, image)
        in_specs=[
            pl.BlockSpec((1, xcp, hw), lambda p, i: (i, 0, 0)),      # x (both phases)
            pl.BlockSpec((1, dcp, hw), lambda p, i: (i * p, 0, 0)),  # d (phase 1 only)
            pl.BlockSpec((9, hw), lambda p, i: (0, 0)),              # tap masks
            pl.BlockSpec((hcp, 9 * dcp), lambda p, i: (0, 0)),       # conv1 W (bf16)
            pl.BlockSpec((hcp, 1), lambda p, i: (0, 0)),             # conv1 b
            pl.BlockSpec((2 * xcp, 9 * hcp), lambda p, i: (0, 0)),   # conv2 a|b W
            pl.BlockSpec((2 * xcp, 1), lambda p, i: (0, 0)),         # conv2 a|b b
            pl.BlockSpec((xcp, 9 * xcp), lambda p, i: (0, 0)),       # conv3 W
            pl.BlockSpec((xcp, 1), lambda p, i: (0, 0)),             # conv3 b
        ],
        out_specs=pl.BlockSpec((1, 2 * xcp, hw), lambda p, i: (i * p, 0, 0)),
        scratch_shapes=[
            pltpu.VMEM((xcp, 1), jnp.float32),                  # sum   -> mean
            pltpu.VMEM((xcp, 1), jnp.float32),                  # sumsq -> inv_std
            pltpu.VMEM((9 * max_cinp, hw), jnp.bfloat16),       # shared packed taps
        ],
        compiler_params=pltpu.CompilerParams(
            dimension_semantics=("arbitrary", "arbitrary"),
            vmem_limit_bytes=vmem_limit),
        cost_estimate=pl.CostEstimate(flops=flops,
                                      transcendentals=n * xcp * hw,
                                      bytes_accessed=bytes_accessed),
    )(x_cm, d_cm, masks, packed["w1"], packed["b1"], packed["wab"],
      packed["bab"], packed["w3"], packed["b3"])

    # Drop channel padding and lay out as cat([xx, out], channel).
    xx = out_p[:, :xc, :]
    y = out_p[:, xcp:xcp + xc, :]
    return jnp.concatenate([xx, y], axis=1).reshape(n, 2 * xc, h, w)


# ----------------------------------------------------------------------------- #
# Pure-JAX reference (correctness check)
# ----------------------------------------------------------------------------- #
def _conv_ref(x_nhwc, w_hwio, b):
    y = jax.lax.conv_general_dilated(
        x_nhwc, w_hwio, window_strides=(1, 1), padding="SAME",
        dimension_numbers=("NHWC", "HWIO", "NHWC"))
    return y + b


def _forward_ref(x_nchw, d_nchw, p):
    x = jnp.transpose(x_nchw, (0, 2, 3, 1)).astype(jnp.float32)
    d = jnp.transpose(d_nchw, (0, 2, 3, 1)).astype(jnp.float32)
    mean = jnp.mean(x, axis=(0, 1, 2), keepdims=True)
    var = jnp.mean(jnp.square(x - mean), axis=(0, 1, 2), keepdims=True)
    xx = (x - mean) * jax.lax.rsqrt(var + 1e-5)
    dd = jax.nn.relu(_conv_ref(d, p["w1"], p["b1"]))
    alpha = jax.nn.sigmoid(_conv_ref(dd, p["wa"], p["ba"]))
    beta = _conv_ref(dd, p["wb"], p["bb"])
    out = _conv_ref(jax.nn.relu(xx * alpha + beta), p["w3"], p["b3"])
    cat = jnp.concatenate([xx, out], axis=-1)
    return jnp.transpose(cat, (0, 3, 1, 2))


# ----------------------------------------------------------------------------- #
def _init_params(key, x_channel, d_channel, hidden_channel):
    ks = jax.random.split(key, 8)
    f = lambda k, shape, s=0.1: (s * jax.random.normal(k, shape)).astype(jnp.float32)
    return {
        # weights stored HWIO (kh, kw, Cin, Cout)
        "w1": f(ks[0], (3, 3, d_channel, hidden_channel)),
        "b1": f(ks[1], (hidden_channel,)),
        "wa": f(ks[2], (3, 3, hidden_channel, x_channel)),
        "ba": f(ks[3], (x_channel,)),
        "wb": f(ks[4], (3, 3, hidden_channel, x_channel)),
        "bb": f(ks[5], (x_channel,)),
        "w3": f(ks[6], (3, 3, x_channel, x_channel)),
        "b3": f(ks[7], (x_channel,)),
    }


if __name__ == "__main__":
    N, XC, DC, HC, H, W = 2, 4, 3, 8, 16, 16

    key = jax.random.PRNGKey(0)
    kx, kd, kp = jax.random.split(key, 3)
    x = jax.random.normal(kx, (N, XC, H, W), dtype=jnp.float32)   # NCHW
    d = jax.random.normal(kd, (N, DC, H, W), dtype=jnp.float32)   # NCHW
    params = _init_params(kp, XC, DC, HC)

    packed = pack_attention_normalization_params(params)         # once, outside jit
    fwd = jax.jit(attention_normalization_forward)
    out = jax.block_until_ready(fwd(x, d, packed))
    assert out.shape == (N, 2 * XC, H, W), out.shape

    ref = jax.block_until_ready(_forward_ref(x, d, params))
    # Conv matmul operands are bf16 (MXU) -> relaxed tolerance vs f32 reference.
    max_err = float(jnp.max(jnp.abs(out - ref)))
    assert jnp.allclose(out, ref, atol=3e-2, rtol=3e-2), max_err

    print("KERNEL_OK")
</pallas_src>

<mosaic_0001>
module attributes {stable_mosaic.version = 11 : i64} {
  func.func @_fused_kernel(%arg0: i32, %arg1: i32, %arg2: memref<1x16x256xf32, #tpu.memory_space<vmem>>, %arg3: memref<1x16x256xf32, #tpu.memory_space<vmem>>, %arg4: memref<9x256xf32, #tpu.memory_space<vmem>>, %arg5: memref<16x144xbf16, #tpu.memory_space<vmem>>, %arg6: memref<16x1xf32, #tpu.memory_space<vmem>>, %arg7: memref<32x144xbf16, #tpu.memory_space<vmem>>, %arg8: memref<32x1xf32, #tpu.memory_space<vmem>>, %arg9: memref<16x144xbf16, #tpu.memory_space<vmem>>, %arg10: memref<16x1xf32, #tpu.memory_space<vmem>>, %arg11: memref<1x32x256xf32, #tpu.memory_space<vmem>>, %arg12: memref<16x1xf32, #tpu.memory_space<vmem>>, %arg13: memref<16x1xf32, #tpu.memory_space<vmem>>, %arg14: memref<144x256xbf16, #tpu.memory_space<vmem>>) attributes {dimension_semantics = [#tpu.dimension_semantics<arbitrary>, #tpu.dimension_semantics<arbitrary>], iteration_bounds = array<i64: 2, 2>, scalar_prefetch = 0 : i64, scratch_operands = 3 : i64, tpu.core_type = #tpu.core_type<tc>, window_params = [{transform_indices = @transform_0, window_bounds = array<i64: 1, 16, 256>}, {transform_indices = @transform_1, window_bounds = array<i64: 1, 16, 256>}, {pipeline_mode = #tpu.pipeline_mode<synchronous>, transform_indices = @transform_2, window_bounds = array<i64: 9, 256>}, {pipeline_mode = #tpu.pipeline_mode<synchronous>, transform_indices = @transform_3, window_bounds = array<i64: 16, 144>}, {pipeline_mode = #tpu.pipeline_mode<synchronous>, transform_indices = @transform_4, window_bounds = array<i64: 16, 1>}, {pipeline_mode = #tpu.pipeline_mode<synchronous>, transform_indices = @transform_5, window_bounds = array<i64: 32, 144>}, {pipeline_mode = #tpu.pipeline_mode<synchronous>, transform_indices = @transform_6, window_bounds = array<i64: 32, 1>}, {pipeline_mode = #tpu.pipeline_mode<synchronous>, transform_indices = @transform_7, window_bounds = array<i64: 16, 144>}, {pipeline_mode = #tpu.pipeline_mode<synchronous>, transform_indices = @transform_8, window_bounds = array<i64: 16, 1>}, {transform_indices = @transform_9, window_bounds = array<i64: 1, 32, 256>}]} {
    %c0_i32 = arith.constant 0 : i32
    %0 = arith.cmpi eq, %arg0, %c0_i32 : i32
    %1 = arith.extui %0 : i1 to i32
    %c0_i32_0 = arith.constant 0 : i32
    %2 = arith.cmpi ne, %1, %c0_i32_0 : i32
    scf.if %2 {
      %c0_i32_2 = arith.constant 0 : i32
      %6 = arith.cmpi eq, %arg1, %c0_i32_2 : i32
      %7 = arith.extui %6 : i1 to i32
      %c0_i32_3 = arith.constant 0 : i32
      %8 = arith.cmpi ne, %7, %c0_i32_3 : i32
      scf.if %8 {
        %cst_17 = arith.constant 0.000000e+00 : f32
        %25 = vector.broadcast %cst_17 : f32 to vector<16x1xf32>
        %c0_18 = arith.constant 0 : index
        %c0_19 = arith.constant 0 : index
        %26 = vector.load %arg12[%c0_18, %c0_19] : memref<16x1xf32, #tpu.memory_space<vmem>>, vector<16x1xf32>
        tpu.vector_store %arg12[%c0_18, %c0_19], %25 {strides = array<i32>} : memref<16x1xf32, #tpu.memory_space<vmem>>, vector<16x1xf32>,
        %cst_20 = arith.constant 0.000000e+00 : f32
        %27 = vector.broadcast %cst_20 : f32 to vector<16x1xf32>
        %c0_21 = arith.constant 0 : index
        %c0_22 = arith.constant 0 : index
        %28 = vector.load %arg13[%c0_21, %c0_22] : memref<16x1xf32, #tpu.memory_space<vmem>>, vector<16x1xf32>
        tpu.vector_store %arg13[%c0_21, %c0_22], %27 {strides = array<i32>} : memref<16x1xf32, #tpu.memory_space<vmem>>, vector<16x1xf32>,
      } else {
      }
      %c0 = arith.constant 0 : index
      %c0_4 = arith.constant 0 : index
      %c0_5 = arith.constant 0 : index
      %9 = vector.load %arg2[%c0, %c0_4, %c0_5] : memref<1x16x256xf32, #tpu.memory_space<vmem>>, vector<1x16x256xf32>
      %10 = vector.shape_cast %9 : vector<1x16x256xf32> to vector<16x256xf32>
      %c0_6 = arith.constant 0 : index
      %c0_7 = arith.constant 0 : index
      %11 = vector.load %arg12[%c0_6, %c0_7] : memref<16x1xf32, #tpu.memory_space<vmem>>, vector<16x1xf32>
      %cst = arith.constant dense<0.000000e+00> : vector<16xf32>
      %12 = vector.multi_reduction <add>, %10, %cst [1] : vector<16x256xf32> to vector<16xf32>
      %13 = vector.shape_cast %12 : vector<16xf32> to vector<16x1xf32>
      %14 = arith.addf %11, %13 : vector<16x1xf32>
      %c0_8 = arith.constant 0 : index
      %c0_9 = arith.constant 0 : index
      %15 = vector.load %arg12[%c0_8, %c0_9] : memref<16x1xf32, #tpu.memory_space<vmem>>, vector<16x1xf32>
      tpu.vector_store %arg12[%c0_8, %c0_9], %14 {strides = array<i32>} : memref<16x1xf32, #tpu.memory_space<vmem>>, vector<16x1xf32>,
      %c0_10 = arith.constant 0 : index
      %c0_11 = arith.constant 0 : index
      %16 = vector.load %arg13[%c0_10, %c0_11] : memref<16x1xf32, #tpu.memory_space<vmem>>, vector<16x1xf32>
      %17 = arith.mulf %10, %10 : vector<16x256xf32>
      %cst_12 = arith.constant dense<0.000000e+00> : vector<16xf32>
      %18 = vector.multi_reduction <add>, %17, %cst_12 [1] : vector<16x256xf32> to vector<16xf32>
      %19 = vector.shape_cast %18 : vector<16xf32> to vector<16x1xf32>
      %20 = arith.addf %16, %19 : vector<16x1xf32>
      %c0_13 = arith.constant 0 : index
      %c0_14 = arith.constant 0 : index
      %21 = vector.load %arg13[%c0_13, %c0_14] : memref<16x1xf32, #tpu.memory_space<vmem>>, vector<16x1xf32>
      tpu.vector_store %arg13[%c0_13, %c0_14], %20 {strides = array<i32>} : memref<16x1xf32, #tpu.memory_space<vmem>>, vector<16x1xf32>,
      %c1_i32_15 = arith.constant 1 : i32
      %22 = arith.cmpi eq, %arg1, %c1_i32_15 : i32
      %23 = arith.extui %22 : i1 to i32
      %c0_i32_16 = arith.constant 0 : i32
      %24 = arith.cmpi ne, %23, %c0_i32_16 : i32
      scf.if %24 {
        %c0_17 = arith.constant 0 : index
        %c0_18 = arith.constant 0 : index
        %25 = vector.load %arg12[%c0_17, %c0_18] : memref<16x1xf32, #tpu.memory_space<vmem>>, vector<16x1xf32>
        %cst_19 = arith.constant 0.001953125 : f32
        %26 = vector.broadcast %cst_19 : f32 to vector<16x1xf32>
        %27 = arith.mulf %25, %26 : vector<16x1xf32>
        %c0_20 = arith.constant 0 : index
        %c0_21 = arith.constant 0 : index
        %28 = vector.load %arg13[%c0_20, %c0_21] : memref<16x1xf32, #tpu.memory_space<vmem>>, vector<16x1xf32>
        %cst_22 = arith.constant 0.001953125 : f32
        %29 = vector.broadcast %cst_22 : f32 to vector<16x1xf32>
        %30 = arith.mulf %28, %29 : vector<16x1xf32>
        %31 = arith.mulf %27, %27 : vector<16x1xf32>
        %32 = arith.subf %30, %31 : vector<16x1xf32>
        %cst_23 = arith.constant 0.000000e+00 : f32
        %33 = vector.broadcast %cst_23 : f32 to vector<16x1xf32>
        %34 = arith.maximumf %32, %33 : vector<16x1xf32>
        %c0_24 = arith.constant 0 : index
        %c0_25 = arith.constant 0 : index
        %35 = vector.load %arg12[%c0_24, %c0_25] : memref<16x1xf32, #tpu.memory_space<vmem>>, vector<16x1xf32>
        tpu.vector_store %arg12[%c0_24, %c0_25], %27 {strides = array<i32>} : memref<16x1xf32, #tpu.memory_space<vmem>>, vector<16x1xf32>,
        %cst_26 = arith.constant 9.99999974E-6 : f32
        %36 = vector.broadcast %cst_26 : f32 to vector<16x1xf32>
        %37 = arith.addf %34, %36 : vector<16x1xf32>
        %38 = math.rsqrt %37 : vector<16x1xf32>
        %c0_27 = arith.constant 0 : index
        %c0_28 = arith.constant 0 : index
        %39 = vector.load %arg13[%c0_27, %c0_28] : memref<16x1xf32, #tpu.memory_space<vmem>>, vector<16x1xf32>
        tpu.vector_store %arg13[%c0_27, %c0_28], %38 {strides = array<i32>} : memref<16x1xf32, #tpu.memory_space<vmem>>, vector<16x1xf32>,
      } else {
      }
    } else {
    }
    %c1_i32 = arith.constant 1 : i32
    %3 = arith.cmpi eq, %arg0, %c1_i32 : i32
    %4 = arith.extui %3 : i1 to i32
    %c0_i32_1 = arith.constant 0 : i32
    %5 = arith.cmpi ne, %4, %c0_i32_1 : i32
    scf.if %5 {
      %c0 = arith.constant 0 : index
      %c0_2 = arith.constant 0 : index
      %6 = vector.load %arg12[%c0, %c0_2] : memref<16x1xf32, #tpu.memory_space<vmem>>, vector<16x1xf32>
      %c0_3 = arith.constant 0 : index
      %c0_4 = arith.constant 0 : index
      %7 = vector.load %arg13[%c0_3, %c0_4] : memref<16x1xf32, #tpu.memory_space<vmem>>, vector<16x1xf32>
      %c0_5 = arith.constant 0 : index
      %c0_6 = arith.constant 0 : index
      %c0_7 = arith.constant 0 : index
      %8 = vector.load %arg2[%c0_5, %c0_6, %c0_7] : memref<1x16x256xf32, #tpu.memory_space<vmem>>, vector<1x16x256xf32>
      %9 = vector.shape_cast %8 : vector<1x16x256xf32> to vector<16x256xf32>
      %10 = vector.broadcast %6 : vector<16x1xf32> to vector<16x256xf32>
      %11 = arith.subf %9, %10 : vector<16x256xf32>
      %12 = vector.broadcast %7 : vector<16x1xf32> to vector<16x256xf32>
      %13 = arith.mulf %11, %12 : vector<16x256xf32>
      %c0_8 = arith.constant 0 : index
      %c0_9 = arith.constant 0 : index
      %c0_10 = arith.constant 0 : index
      %14 = vector.load %arg3[%c0_8, %c0_9, %c0_10] : memref<1x16x256xf32, #tpu.memory_space<vmem>>, vector<1x16x256xf32>
      %15 = vector.shape_cast %14 : vector<1x16x256xf32> to vector<16x256xf32>
      %c17_i32 = arith.constant 17 : i32
      %16 = tpu.dynamic_rotate %15 by %c17_i32 dim 1 : vector<16x256xf32>, i32 -> vector<16x256xf32>
      %c0_11 = arith.constant 0 : index
      %c0_12 = arith.constant 0 : index
      %17 = vector.load %arg4[%c0_11, %c0_12] : memref<9x256xf32, #tpu.memory_space<vmem>>, vector<1x256xf32>
      %18 = vector.broadcast %17 : vector<1x256xf32> to vector<16x256xf32>
      %19 = arith.mulf %16, %18 : vector<16x256xf32>
      %20 = arith.truncf %19 : vector<16x256xf32> to vector<16x256xbf16>
      %c0_13 = arith.constant 0 : index
      %c0_14 = arith.constant 0 : index
      %21 = vector.load %arg14[%c0_13, %c0_14] : memref<144x256xbf16, #tpu.memory_space<vmem>>, vector<16x256xbf16>
      tpu.vector_store %arg14[%c0_13, %c0_14], %20 {strides = array<i32>} : memref<144x256xbf16, #tpu.memory_space<vmem>>, vector<16x256xbf16>,
      %c16_i32 = arith.constant 16 : i32
      %22 = tpu.dynamic_rotate %15 by %c16_i32 dim 1 : vector<16x256xf32>, i32 -> vector<16x256xf32>
      %c1 = arith.constant 1 : index
      %c0_15 = arith.constant 0 : index
      %23 = vector.load %arg4[%c1, %c0_15] : memref<9x256xf32, #tpu.memory_space<vmem>>, vector<1x256xf32>
      %24 = vector.broadcast %23 : vector<1x256xf32> to vector<16x256xf32>
      %25 = arith.mulf %22, %24 : vector<16x256xf32>
      %26 = arith.truncf %25 : vector<16x256xf32> to vector<16x256xbf16>
      %c16 = arith.constant 16 : index
      %c0_16 = arith.constant 0 : index
      %27 = vector.load %arg14[%c16, %c0_16] : memref<144x256xbf16, #tpu.memory_space<vmem>>, vector<16x256xbf16>
      tpu.vector_store %arg14[%c16, %c0_16], %26 {strides = array<i32>} : memref<144x256xbf16, #tpu.memory_space<vmem>>, vector<16x256xbf16>,
      %c15_i32 = arith.constant 15 : i32
      %28 = tpu.dynamic_rotate %15 by %c15_i32 dim 1 : vector<16x256xf32>, i32 -> vector<16x256xf32>
      %c2 = arith.constant 2 : index
      %c0_17 = arith.constant 0 : index
      %29 = vector.load %arg4[%c2, %c0_17] : memref<9x256xf32, #tpu.memory_space<vmem>>, vector<1x256xf32>
      %30 = vector.broadcast %29 : vector<1x256xf32> to vector<16x256xf32>
      %31 = arith.mulf %28, %30 : vector<16x256xf32>
      %32 = arith.truncf %31 : vector<16x256xf32> to vector<16x256xbf16>
      %c32 = arith.constant 32 : index
      %c0_18 = arith.constant 0 : index
      %33 = vector.load %arg14[%c32, %c0_18] : memref<144x256xbf16, #tpu.memory_space<vmem>>, vector<16x256xbf16>
      tpu.vector_store %arg14[%c32, %c0_18], %32 {strides = array<i32>} : memref<144x256xbf16, #tpu.memory_space<vmem>>, vector<16x256xbf16>,
      %c1_i32_19 = arith.constant 1 : i32
      %34 = tpu.dynamic_rotate %15 by %c1_i32_19 dim 1 : vector<16x256xf32>, i32 -> vector<16x256xf32>
      %c3 = arith.constant 3 : index
      %c0_20 = arith.constant 0 : index
      %35 = vector.load %arg4[%c3, %c0_20] : memref<9x256xf32, #tpu.memory_space<vmem>>, vector<1x256xf32>
      %36 = vector.broadcast %35 : vector<1x256xf32> to vector<16x256xf32>
      %37 = arith.mulf %34, %36 : vector<16x256xf32>
      %38 = arith.truncf %37 : vector<16x256xf32> to vector<16x256xbf16>
      %c48 = arith.constant 48 : index
      %c0_21 = arith.constant 0 : index
      %39 = vector.load %arg14[%c48, %c0_21] : memref<144x256xbf16, #tpu.memory_space<vmem>>, vector<16x256xbf16>
      tpu.vector_store %arg14[%c48, %c0_21], %38 {strides = array<i32>} : memref<144x256xbf16, #tpu.memory_space<vmem>>, vector<16x256xbf16>,
      %40 = arith.truncf %15 : vector<16x256xf32> to vector<16x256xbf16>
      %c64 = arith.constant 64 : index
      %c0_22 = arith.constant 0 : index
      %41 = vector.load %arg14[%c64, %c0_22] : memref<144x256xbf16, #tpu.memory_space<vmem>>, vector<16x256xbf16>
      tpu.vector_store %arg14[%c64, %c0_22], %40 {strides = array<i32>} : memref<144x256xbf16, #tpu.memory_space<vmem>>, vector<16x256xbf16>,
      %c255_i32 = arith.constant 255 : i32
      %42 = tpu.dynamic_rotate %15 by %c255_i32 dim 1 : vector<16x256xf32>, i32 -> vector<16x256xf32>
      %c5 = arith.constant 5 : index
      %c0_23 = arith.constant 0 : index
      %43 = vector.load %arg4[%c5, %c0_23] : memref<9x256xf32, #tpu.memory_space<vmem>>, vector<1x256xf32>
      %44 = vector.broadcast %43 : vector<1x256xf32> to vector<16x256xf32>
      %45 = arith.mulf %42, %44 : vector<16x256xf32>
      %46 = arith.truncf %45 : vector<16x256xf32> to vector<16x256xbf16>
      %c80 = arith.constant 80 : index
      %c0_24 = arith.constant 0 : index
      %47 = vector.load %arg14[%c80, %c0_24] : memref<144x256xbf16, #tpu.memory_space<vmem>>, vector<16x256xbf16>
      tpu.vector_store %arg14[%c80, %c0_24], %46 {strides = array<i32>} : memref<144x256xbf16, #tpu.memory_space<vmem>>, vector<16x256xbf16>,
      %c241_i32 = arith.constant 241 : i32
      %48 = tpu.dynamic_rotate %15 by %c241_i32 dim 1 : vector<16x256xf32>, i32 -> vector<16x256xf32>
      %c6 = arith.constant 6 : index
      %c0_25 = arith.constant 0 : index
      %49 = vector.load %arg4[%c6, %c0_25] : memref<9x256xf32, #tpu.memory_space<vmem>>, vector<1x256xf32>
      %50 = vector.broadcast %49 : vector<1x256xf32> to vector<16x256xf32>
      %51 = arith.mulf %48, %50 : vector<16x256xf32>
      %52 = arith.truncf %51 : vector<16x256xf32> to vector<16x256xbf16>
      %c96 = arith.constant 96 : index
      %c0_26 = arith.constant 0 : index
      %53 = vector.load %arg14[%c96, %c0_26] : memref<144x256xbf16, #tpu.memory_space<vmem>>, vector<16x256xbf16>
      tpu.vector_store %arg14[%c96, %c0_26], %52 {strides = array<i32>} : memref<144x256xbf16, #tpu.memory_space<vmem>>, vector<16x256xbf16>,
      %c240_i32 = arith.constant 240 : i32
      %54 = tpu.dynamic_rotate %15 by %c240_i32 dim 1 : vector<16x256xf32>, i32 -> vector<16x256xf32>
      %c7 = arith.constant 7 : index
      %c0_27 = arith.constant 0 : index
      %55 = vector.load %arg4[%c7, %c0_27] : memref<9x256xf32, #tpu.memory_space<vmem>>, vector<1x256xf32>
      %56 = vector.broadcast %55 : vector<1x256xf32> to vector<16x256xf32>
      %57 = arith.mulf %54, %56 : vector<16x256xf32>
      %58 = arith.truncf %57 : vector<16x256xf32> to vector<16x256xbf16>
      %c112 = arith.constant 112 : index
      %c0_28 = arith.constant 0 : index
      %59 = vector.load %arg14[%c112, %c0_28] : memref<144x256xbf16, #tpu.memory_space<vmem>>, vector<16x256xbf16>
      tpu.vector_store %arg14[%c112, %c0_28], %58 {strides = array<i32>} : memref<144x256xbf16, #tpu.memory_space<vmem>>, vector<16x256xbf16>,
      %c239_i32 = arith.constant 239 : i32
      %60 = tpu.dynamic_rotate %15 by %c239_i32 dim 1 : vector<16x256xf32>, i32 -> vector<16x256xf32>
      %c8 = arith.constant 8 : index
      %c0_29 = arith.constant 0 : index
      %61 = vector.load %arg4[%c8, %c0_29] : memref<9x256xf32, #tpu.memory_space<vmem>>, vector<1x256xf32>
      %62 = vector.broadcast %61 : vector<1x256xf32> to vector<16x256xf32>
      %63 = arith.mulf %60, %62 : vector<16x256xf32>
      %64 = arith.truncf %63 : vector<16x256xf32> to vector<16x256xbf16>
      %c128 = arith.constant 128 : index
      %c0_30 = arith.constant 0 : index
      %65 = vector.load %arg14[%c128, %c0_30] : memref<144x256xbf16, #tpu.memory_space<vmem>>, vector<16x256xbf16>
      tpu.vector_store %arg14[%c128, %c0_30], %64 {strides = array<i32>} : memref<144x256xbf16, #tpu.memory_space<vmem>>, vector<16x256xbf16>,
      %c0_31 = arith.constant 0 : index
      %c0_32 = arith.constant 0 : index
      %66 = vector.load %arg5[%c0_31, %c0_32] : memref<16x144xbf16, #tpu.memory_space<vmem>>, vector<16x144xbf16>
      %c0_33 = arith.constant 0 : index
      %c0_34 = arith.constant 0 : index
      %67 = vector.load %arg14[%c0_33, %c0_34] : memref<144x256xbf16, #tpu.memory_space<vmem>>, vector<144x256xbf16>
      %cst = arith.constant dense<0.000000e+00> : vector<16x256xf32>
      %68 = tpu.matmul %66, %67, %cst {dimension_numbers = #tpu.dot_dimension_numbers<[1], [0], [0], [1], [0, 0, 1, 1], [], []>} : vector<16x144xbf16>, vector<144x256xbf16>, vector<16x256xf32> -> vector<16x256xf32>
      %c0_35 = arith.constant 0 : index
      %c0_36 = arith.constant 0 : index
      %69 = vector.load %arg6[%c0_35, %c0_36] : memref<16x1xf32, #tpu.memory_space<vmem>>, vector<16x1xf32>
      %70 = vector.broadcast %69 : vector<16x1xf32> to vector<16x256xf32>
      %71 = arith.addf %68, %70 : vector<16x256xf32>
      %cst_37 = arith.constant 0.000000e+00 : f32
      %72 = vector.broadcast %cst_37 : f32 to vector<16x256xf32>
      %73 = arith.maximumf %71, %72 : vector<16x256xf32>
      %c17_i32_38 = arith.constant 17 : i32
      %74 = tpu.dynamic_rotate %73 by %c17_i32_38 dim 1 : vector<16x256xf32>, i32 -> vector<16x256xf32>
      %c0_39 = arith.constant 0 : index
      %c0_40 = arith.constant 0 : index
      %75 = vector.load %arg4[%c0_39, %c0_40] : memref<9x256xf32, #tpu.memory_space<vmem>>, vector<1x256xf32>
      %76 = vector.broadcast %75 : vector<1x256xf32> to vector<16x256xf32>
      %77 = arith.mulf %74, %76 : vector<16x256xf32>
      %78 = arith.truncf %77 : vector<16x256xf32> to vector<16x256xbf16>
      %c0_41 = arith.constant 0 : index
      %c0_42 = arith.constant 0 : index
      %79 = vector.load %arg14[%c0_41, %c0_42] : memref<144x256xbf16, #tpu.memory_space<vmem>>, vector<16x256xbf16>
      tpu.vector_store %arg14[%c0_41, %c0_42], %78 {strides = array<i32>} : memref<144x256xbf16, #tpu.memory_space<vmem>>, vector<16x256xbf16>,
      %c16_i32_43 = arith.constant 16 : i32
      %80 = tpu.dynamic_rotate %73 by %c16_i32_43 dim 1 : vector<16x256xf32>, i32 -> vector<16x256xf32>
      %c1_44 = arith.constant 1 : index
      %c0_45 = arith.constant 0 : index
      %81 = vector.load %arg4[%c1_44, %c0_45] : memref<9x256xf32, #tpu.memory_space<vmem>>, vector<1x256xf32>
      %82 = vector.broadcast %81 : vector<1x256xf32> to vector<16x256xf32>
      %83 = arith.mulf %80, %82 : vector<16x256xf32>
      %84 = arith.truncf %83 : vector<16x256xf32> to vector<16x256xbf16>
      %c16_46 = arith.constant 16 : index
      %c0_47 = arith.constant 0 : index
      %85 = vector.load %arg14[%c16_46, %c0_47] : memref<144x256xbf16, #tpu.memory_space<vmem>>, vector<16x256xbf16>
      tpu.vector_store %arg14[%c16_46, %c0_47], %84 {strides = array<i32>} : memref<144x256xbf16, #tpu.memory_space<vmem>>, vector<16x256xbf16>,
      %c15_i32_48 = arith.constant 15 : i32
      %86 = tpu.dynamic_rotate %73 by %c15_i32_48 dim 1 : vector<16x256xf32>, i32 -> vector<16x256xf32>
      %c2_49 = arith.constant 2 : index
      %c0_50 = arith.constant 0 : index
      %87 = vector.load %arg4[%c2_49, %c0_50] : memref<9x256xf32, #tpu.memory_space<vmem>>, vector<1x256xf32>
      %88 = vector.broadcast %87 : vector<1x256xf32> to vector<16x256xf32>
      %89 = arith.mulf %86, %88 : vector<16x256xf32>
      %90 = arith.truncf %89 : vector<16x256xf32> to vector<16x256xbf16>
      %c32_51 = arith.constant 32 : index
      %c0_52 = arith.constant 0 : index
      %91 = vector.load %arg14[%c32_51, %c0_52] : memref<144x256xbf16, #tpu.memory_space<vmem>>, vector<16x256xbf16>
      tpu.vector_store %arg14[%c32_51, %c0_52], %90 {strides = array<i32>} : memref<144x256xbf16, #tpu.memory_space<vmem>>, vector<16x256xbf16>,
      %c1_i32_53 = arith.constant 1 : i32
      %92 = tpu.dynamic_rotate %73 by %c1_i32_53 dim 1 : vector<16x256xf32>, i32 -> vector<16x256xf32>
      %c3_54 = arith.constant 3 : index
      %c0_55 = arith.constant 0 : index
      %93 = vector.load %arg4[%c3_54, %c0_55] : memref<9x256xf32, #tpu.memory_space<vmem>>, vector<1x256xf32>
      %94 = vector.broadcast %93 : vector<1x256xf32> to vector<16x256xf32>
      %95 = arith.mulf %92, %94 : vector<16x256xf32>
      %96 = arith.truncf %95 : vector<16x256xf32> to vector<16x256xbf16>
      %c48_56 = arith.constant 48 : index
      %c0_57 = arith.constant 0 : index
      %97 = vector.load %arg14[%c48_56, %c0_57] : memref<144x256xbf16, #tpu.memory_space<vmem>>, vector<16x256xbf16>
      tpu.vector_store %arg14[%c48_56, %c0_57], %96 {strides = array<i32>} : memref<144x256xbf16, #tpu.memory_space<vmem>>, vector<16x256xbf16>,
      %98 = arith.truncf %73 : vector<16x256xf32> to vector<16x256xbf16>
      %c64_58 = arith.constant 64 : index
      %c0_59 = arith.constant 0 : index
      %99 = vector.load %arg14[%c64_58, %c0_59] : memref<144x256xbf16, #tpu.memory_space<vmem>>, vector<16x256xbf16>
      tpu.vector_store %arg14[%c64_58, %c0_59], %98 {strides = array<i32>} : memref<144x256xbf16, #tpu.memory_space<vmem>>, vector<16x256xbf16>,
      %c255_i32_60 = arith.constant 255 : i32
      %100 = tpu.dynamic_rotate %73 by %c255_i32_60 dim 1 : vector<16x256xf32>, i32 -> vector<16x256xf32>
      %c5_61 = arith.constant 5 : index
      %c0_62 = arith.constant 0 : index
      %101 = vector.load %arg4[%c5_61, %c0_62] : memref<9x256xf32, #tpu.memory_space<vmem>>, vector<1x256xf32>
      %102 = vector.broadcast %101 : vector<1x256xf32> to vector<16x256xf32>
      %103 = arith.mulf %100, %102 : vector<16x256xf32>
      %104 = arith.truncf %103 : vector<16x256xf32> to vector<16x256xbf16>
      %c80_63 = arith.constant 80 : index
      %c0_64 = arith.constant 0 : index
      %105 = vector.load %arg14[%c80_63, %c0_64] : memref<144x256xbf16, #tpu.memory_space<vmem>>, vector<16x256xbf16>
      tpu.vector_store %arg14[%c80_63, %c0_64], %104 {strides = array<i32>} : memref<144x256xbf16, #tpu.memory_space<vmem>>, vector<16x256xbf16>,
      %c241_i32_65 = arith.constant 241 : i32
      %106 = tpu.dynamic_rotate %73 by %c241_i32_65 dim 1 : vector<16x256xf32>, i32 -> vector<16x256xf32>
      %c6_66 = arith.constant 6 : index
      %c0_67 = arith.constant 0 : index
      %107 = vector.load %arg4[%c6_66, %c0_67] : memref<9x256xf32, #tpu.memory_space<vmem>>, vector<1x256xf32>
      %108 = vector.broadcast %107 : vector<1x256xf32> to vector<16x256xf32>
      %109 = arith.mulf %106, %108 : vector<16x256xf32>
      %110 = arith.truncf %109 : vector<16x256xf32> to vector<16x256xbf16>
      %c96_68 = arith.constant 96 : index
      %c0_69 = arith.constant 0 : index
      %111 = vector.load %arg14[%c96_68, %c0_69] : memref<144x256xbf16, #tpu.memory_space<vmem>>, vector<16x256xbf16>
      tpu.vector_store %arg14[%c96_68, %c0_69], %110 {strides = array<i32>} : memref<144x256xbf16, #tpu.memory_space<vmem>>, vector<16x256xbf16>,
      %c240_i32_70 = arith.constant 240 : i32
      %112 = tpu.dynamic_rotate %73 by %c240_i32_70 dim 1 : vector<16x256xf32>, i32 -> vector<16x256xf32>
      %c7_71 = arith.constant 7 : index
      %c0_72 = arith.constant 0 : index
      %113 = vector.load %arg4[%c7_71, %c0_72] : memref<9x256xf32, #tpu.memory_space<vmem>>, vector<1x256xf32>
      %114 = vector.broadcast %113 : vector<1x256xf32> to vector<16x256xf32>
      %115 = arith.mulf %112, %114 : vector<16x256xf32>
      %116 = arith.truncf %115 : vector<16x256xf32> to vector<16x256xbf16>
      %c112_73 = arith.constant 112 : index
      %c0_74 = arith.constant 0 : index
      %117 = vector.load %arg14[%c112_73, %c0_74] : memref<144x256xbf16, #tpu.memory_space<vmem>>, vector<16x256xbf16>
      tpu.vector_store %arg14[%c112_73, %c0_74], %116 {strides = array<i32>} : memref<144x256xbf16, #tpu.memory_space<vmem>>, vector<16x256xbf16>,
      %c239_i32_75 = arith.constant 239 : i32
      %118 = tpu.dynamic_rotate %73 by %c239_i32_75 dim 1 : vector<16x256xf32>, i32 -> vector<16x256xf32>
      %c8_76 = arith.constant 8 : index
      %c0_77 = arith.constant 0 : index
      %119 = vector.load %arg4[%c8_76, %c0_77] : memref<9x256xf32, #tpu.memory_space<vmem>>, vector<1x256xf32>
      %120 = vector.broadcast %119 : vector<1x256xf32> to vector<16x256xf32>
      %121 = arith.mulf %118, %120 : vector<16x256xf32>
      %122 = arith.truncf %121 : vector<16x256xf32> to vector<16x256xbf16>
      %c128_78 = arith.constant 128 : index
      %c0_79 = arith.constant 0 : index
      %123 = vector.load %arg14[%c128_78, %c0_79] : memref<144x256xbf16, #tpu.memory_space<vmem>>, vector<16x256xbf16>
      tpu.vector_store %arg14[%c128_78, %c0_79], %122 {strides = array<i32>} : memref<144x256xbf16, #tpu.memory_space<vmem>>, vector<16x256xbf16>,
      %c0_80 = arith.constant 0 : index
      %c0_81 = arith.constant 0 : index
      %124 = vector.load %arg7[%c0_80, %c0_81] : memref<32x144xbf16, #tpu.memory_space<vmem>>, vector<32x144xbf16>
      %c0_82 = arith.constant 0 : index
      %c0_83 = arith.constant 0 : index
      %125 = vector.load %arg14[%c0_82, %c0_83] : memref<144x256xbf16, #tpu.memory_space<vmem>>, vector<144x256xbf16>
      %cst_84 = arith.constant dense<0.000000e+00> : vector<32x256xf32>
      %126 = tpu.matmul %124, %125, %cst_84 {dimension_numbers = #tpu.dot_dimension_numbers<[1], [0], [0], [1], [0, 0, 1, 1], [], []>} : vector<32x144xbf16>, vector<144x256xbf16>, vector<32x256xf32> -> vector<32x256xf32>
      %c0_85 = arith.constant 0 : index
      %c0_86 = arith.constant 0 : index
      %127 = vector.load %arg8[%c0_85, %c0_86] : memref<32x1xf32, #tpu.memory_space<vmem>>, vector<32x1xf32>
      %128 = vector.broadcast %127 : vector<32x1xf32> to vector<32x256xf32>
      %129 = arith.addf %126, %128 : vector<32x256xf32>
      %130 = vector.extract_strided_slice %129 {offsets = [0, 0], sizes = [16, 256], strides = [1, 1]} : vector<32x256xf32> to vector<16x256xf32>
      %131 = arith.negf %130 : vector<16x256xf32>
      %132 = math.exp %131 : vector<16x256xf32>
      %cst_87 = arith.constant 1.000000e+00 : f32
      %133 = vector.broadcast %cst_87 : f32 to vector<16x256xf32>
      %134 = arith.addf %133, %132 : vector<16x256xf32>
      %135 = arith.divf %133, %134 : vector<16x256xf32>
      %136 = vector.extract_strided_slice %129 {offsets = [16, 0], sizes = [16, 256], strides = [1, 1]} : vector<32x256xf32> to vector<16x256xf32>
      %137 = arith.mulf %13, %135 : vector<16x256xf32>
      %138 = arith.addf %137, %136 : vector<16x256xf32>
      %cst_88 = arith.constant 0.000000e+00 : f32
      %139 = vector.broadcast %cst_88 : f32 to vector<16x256xf32>
      %140 = arith.maximumf %138, %139 : vector<16x256xf32>
      %c17_i32_89 = arith.constant 17 : i32
      %141 = tpu.dynamic_rotate %140 by %c17_i32_89 dim 1 : vector<16x256xf32>, i32 -> vector<16x256xf32>
      %c0_90 = arith.constant 0 : index
      %c0_91 = arith.constant 0 : index
      %142 = vector.load %arg4[%c0_90, %c0_91] : memref<9x256xf32, #tpu.memory_space<vmem>>, vector<1x256xf32>
      %143 = vector.broadcast %142 : vector<1x256xf32> to vector<16x256xf32>
      %144 = arith.mulf %141, %143 : vector<16x256xf32>
      %145 = arith.truncf %144 : vector<16x256xf32> to vector<16x256xbf16>
      %c0_92 = arith.constant 0 : index
      %c0_93 = arith.constant 0 : index
      %146 = vector.load %arg14[%c0_92, %c0_93] : memref<144x256xbf16, #tpu.memory_space<vmem>>, vector<16x256xbf16>
      tpu.vector_store %arg14[%c0_92, %c0_93], %145 {strides = array<i32>} : memref<144x256xbf16, #tpu.memory_space<vmem>>, vector<16x256xbf16>,
      %c16_i32_94 = arith.constant 16 : i32
      %147 = tpu.dynamic_rotate %140 by %c16_i32_94 dim 1 : vector<16x256xf32>, i32 -> vector<16x256xf32>
      %c1_95 = arith.constant 1 : index
      %c0_96 = arith.constant 0 : index
      %148 = vector.load %arg4[%c1_95, %c0_96] : memref<9x256xf32, #tpu.memory_space<vmem>>, vector<1x256xf32>
      %149 = vector.broadcast %148 : vector<1x256xf32> to vector<16x256xf32>
      %150 = arith.mulf %147, %149 : vector<16x256xf32>
      %151 = arith.truncf %150 : vector<16x256xf32> to vector<16x256xbf16>
      %c16_97 = arith.constant 16 : index
      %c0_98 = arith.constant 0 : index
      %152 = vector.load %arg14[%c16_97, %c0_98] : memref<144x256xbf16, #tpu.memory_space<vmem>>, vector<16x256xbf16>
      tpu.vector_store %arg14[%c16_97, %c0_98], %151 {strides = array<i32>} : memref<144x256xbf16, #tpu.memory_space<vmem>>, vector<16x256xbf16>,
      %c15_i32_99 = arith.constant 15 : i32
      %153 = tpu.dynamic_rotate %140 by %c15_i32_99 dim 1 : vector<16x256xf32>, i32 -> vector<16x256xf32>
      %c2_100 = arith.constant 2 : index
      %c0_101 = arith.constant 0 : index
      %154 = vector.load %arg4[%c2_100, %c0_101] : memref<9x256xf32, #tpu.memory_space<vmem>>, vector<1x256xf32>
      %155 = vector.broadcast %154 : vector<1x256xf32> to vector<16x256xf32>
      %156 = arith.mulf %153, %155 : vector<16x256xf32>
      %157 = arith.truncf %156 : vector<16x256xf32> to vector<16x256xbf16>
      %c32_102 = arith.constant 32 : index
      %c0_103 = arith.constant 0 : index
      %158 = vector.load %arg14[%c32_102, %c0_103] : memref<144x256xbf16, #tpu.memory_space<vmem>>, vector<16x256xbf16>
      tpu.vector_store %arg14[%c32_102, %c0_103], %157 {strides = array<i32>} : memref<144x256xbf16, #tpu.memory_space<vmem>>, vector<16x256xbf16>,
      %c1_i32_104 = arith.constant 1 : i32
      %159 = tpu.dynamic_rotate %140 by %c1_i32_104 dim 1 : vector<16x256xf32>, i32 -> vector<16x256xf32>
      %c3_105 = arith.constant 3 : index
      %c0_106 = arith.constant 0 : index
      %160 = vector.load %arg4[%c3_105, %c0_106] : memref<9x256xf32, #tpu.memory_space<vmem>>, vector<1x256xf32>
      %161 = vector.broadcast %160 : vector<1x256xf32> to vector<16x256xf32>
      %162 = arith.mulf %159, %161 : vector<16x256xf32>
      %163 = arith.truncf %162 : vector<16x256xf32> to vector<16x256xbf16>
      %c48_107 = arith.constant 48 : index
      %c0_108 = arith.constant 0 : index
      %164 = vector.load %arg14[%c48_107, %c0_108] : memref<144x256xbf16, #tpu.memory_space<vmem>>, vector<16x256xbf16>
      tpu.vector_store %arg14[%c48_107, %c0_108], %163 {strides = array<i32>} : memref<144x256xbf16, #tpu.memory_space<vmem>>, vector<16x256xbf16>,
      %165 = arith.truncf %140 : vector<16x256xf32> to vector<16x256xbf16>
      %c64_109 = arith.constant 64 : index
      %c0_110 = arith.constant 0 : index
      %166 = vector.load %arg14[%c64_109, %c0_110] : memref<144x256xbf16, #tpu.memory_space<vmem>>, vector<16x256xbf16>
      tpu.vector_store %arg14[%c64_109, %c0_110], %165 {strides = array<i32>} : memref<144x256xbf16, #tpu.memory_space<vmem>>, vector<16x256xbf16>,
      %c255_i32_111 = arith.constant 255 : i32
      %167 = tpu.dynamic_rotate %140 by %c255_i32_111 dim 1 : vector<16x256xf32>, i32 -> vector<16x256xf32>
      %c5_112 = arith.constant 5 : index
      %c0_113 = arith.constant 0 : index
      %168 = vector.load %arg4[%c5_112, %c0_113] : memref<9x256xf32, #tpu.memory_space<vmem>>, vector<1x256xf32>
      %169 = vector.broadcast %168 : vector<1x256xf32> to vector<16x256xf32>
      %170 = arith.mulf %167, %169 : vector<16x256xf32>
      %171 = arith.truncf %170 : vector<16x256xf32> to vector<16x256xbf16>
      %c80_114 = arith.constant 80 : index
      %c0_115 = arith.constant 0 : index
      %172 = vector.load %arg14[%c80_114, %c0_115] : memref<144x256xbf16, #tpu.memory_space<vmem>>, vector<16x256xbf16>
      tpu.vector_store %arg14[%c80_114, %c0_115], %171 {strides = array<i32>} : memref<144x256xbf16, #tpu.memory_space<vmem>>, vector<16x256xbf16>,
      %c241_i32_116 = arith.constant 241 : i32
      %173 = tpu.dynamic_rotate %140 by %c241_i32_116 dim 1 : vector<16x256xf32>, i32 -> vector<16x256xf32>
      %c6_117 = arith.constant 6 : index
      %c0_118 = arith.constant 0 : index
      %174 = vector.load %arg4[%c6_117, %c0_118] : memref<9x256xf32, #tpu.memory_space<vmem>>, vector<1x256xf32>
      %175 = vector.broadcast %174 : vector<1x256xf32> to vector<16x256xf32>
      %176 = arith.mulf %173, %175 : vector<16x256xf32>
      %177 = arith.truncf %176 : vector<16x256xf32> to vector<16x256xbf16>
      %c96_119 = arith.constant 96 : index
      %c0_120 = arith.constant 0 : index
      %178 = vector.load %arg14[%c96_119, %c0_120] : memref<144x256xbf16, #tpu.memory_space<vmem>>, vector<16x256xbf16>
      tpu.vector_store %arg14[%c96_119, %c0_120], %177 {strides = array<i32>} : memref<144x256xbf16, #tpu.memory_space<vmem>>, vector<16x256xbf16>,
      %c240_i32_121 = arith.constant 240 : i32
      %179 = tpu.dynamic_rotate %140 by %c240_i32_121 dim 1 : vector<16x256xf32>, i32 -> vector<16x256xf32>
      %c7_122 = arith.constant 7 : index
      %c0_123 = arith.constant 0 : index
      %180 = vector.load %arg4[%c7_122, %c0_123] : memref<9x256xf32, #tpu.memory_space<vmem>>, vector<1x256xf32>
      %181 = vector.broadcast %180 : vector<1x256xf32> to vector<16x256xf32>
      %182 = arith.mulf %179, %181 : vector<16x256xf32>
      %183 = arith.truncf %182 : vector<16x256xf32> to vector<16x256xbf16>
      %c112_124 = arith.constant 112 : index
      %c0_125 = arith.constant 0 : index
      %184 = vector.load %arg14[%c112_124, %c0_125] : memref<144x256xbf16, #tpu.memory_space<vmem>>, vector<16x256xbf16>
      tpu.vector_store %arg14[%c112_124, %c0_125], %183 {strides = array<i32>} : memref<144x256xbf16, #tpu.memory_space<vmem>>, vector<16x256xbf16>,
      %c239_i32_126 = arith.constant 239 : i32
      %185 = tpu.dynamic_rotate %140 by %c239_i32_126 dim 1 : vector<16x256xf32>, i32 -> vector<16x256xf32>
      %c8_127 = arith.constant 8 : index
      %c0_128 = arith.constant 0 : index
      %186 = vector.load %arg4[%c8_127, %c0_128] : memref<9x256xf32, #tpu.memory_space<vmem>>, vector<1x256xf32>
      %187 = vector.broadcast %186 : vector<1x256xf32> to vector<16x256xf32>
      %188 = arith.mulf %185, %187 : vector<16x256xf32>
      %189 = arith.truncf %188 : vector<16x256xf32> to vector<16x256xbf16>
      %c128_129 = arith.constant 128 : index
      %c0_130 = arith.constant 0 : index
      %190 = vector.load %arg14[%c128_129, %c0_130] : memref<144x256xbf16, #tpu.memory_space<vmem>>, vector<16x256xbf16>
      tpu.vector_store %arg14[%c128_129, %c0_130], %189 {strides = array<i32>} : memref<144x256xbf16, #tpu.memory_space<vmem>>, vector<16x256xbf16>,
      %c0_131 = arith.constant 0 : index
      %c0_132 = arith.constant 0 : index
      %191 = vector.load %arg9[%c0_131, %c0_132] : memref<16x144xbf16, #tpu.memory_space<vmem>>, vector<16x144xbf16>
      %c0_133 = arith.constant 0 : index
      %c0_134 = arith.constant 0 : index
      %192 = vector.load %arg14[%c0_133, %c0_134] : memref<144x256xbf16, #tpu.memory_space<vmem>>, vector<144x256xbf16>
      %cst_135 = arith.constant dense<0.000000e+00> : vector<16x256xf32>
      %193 = tpu.matmul %191, %192, %cst_135 {dimension_numbers = #tpu.dot_dimension_numbers<[1], [0], [0], [1], [0, 0, 1, 1], [], []>} : vector<16x144xbf16>, vector<144x256xbf16>, vector<16x256xf32> -> vector<16x256xf32>
      %c0_136 = arith.constant 0 : index
      %c0_137 = arith.constant 0 : index
      %194 = vector.load %arg10[%c0_136, %c0_137] : memref<16x1xf32, #tpu.memory_space<vmem>>, vector<16x1xf32>
      %195 = vector.broadcast %194 : vector<16x1xf32> to vector<16x256xf32>
      %196 = arith.addf %193, %195 : vector<16x256xf32>
      %c0_138 = arith.constant 0 : index
      %c0_139 = arith.constant 0 : index
      %c0_140 = arith.constant 0 : index
      %197 = vector.load %arg11[%c0_138, %c0_139, %c0_140] : memref<1x32x256xf32, #tpu.memory_space<vmem>>, vector<1x16x256xf32>
      %198 = vector.shape_cast %197 : vector<1x16x256xf32> to vector<16x256xf32>
      %199 = vector.shape_cast %13 : vector<16x256xf32> to vector<1x16x256xf32>
      tpu.vector_store %arg11[%c0_138, %c0_139, %c0_140], %199 {strides = array<i32>} : memref<1x32x256xf32, #tpu.memory_space<vmem>>, vector<1x16x256xf32>,
      %c0_141 = arith.constant 0 : index
      %c16_142 = arith.constant 16 : index
      %c0_143 = arith.constant 0 : index
      %200 = vector.load %arg11[%c0_141, %c16_142, %c0_143] : memref<1x32x256xf32, #tpu.memory_space<vmem>>, vector<1x16x256xf32>
      %201 = vector.shape_cast %200 : vector<1x16x256xf32> to vector<16x256xf32>
      %202 = vector.shape_cast %196 : vector<16x256xf32> to vector<1x16x256xf32>
      tpu.vector_store %arg11[%c0_141, %c16_142, %c0_143], %202 {strides = array<i32>} : memref<1x32x256xf32, #tpu.memory_space<vmem>>, vector<1x16x256xf32>,
    } else {
    }
    return
  }
  func.func @transform_0(%arg0: i32, %arg1: i32) -> (i32, i32, i32) {
    %c0_i32 = arith.constant 0 : i32
    %c0_i32_0 = arith.constant 0 : i32
    %c0_i32_1 = arith.constant 0 : i32
    return %arg1, %c0_i32, %c0_i32_0 : i32, i32, i32
  }
  func.func @transform_1(%arg0: i32, %arg1: i32) -> (i32, i32, i32) {
    %0 = arith.muli %arg1, %arg0 : i32
    %c0_i32 = arith.constant 0 : i32
    %c0_i32_0 = arith.constant 0 : i32
    %c0_i32_1 = arith.constant 0 : i32
    return %0, %c0_i32, %c0_i32_0 : i32, i32, i32
  }
  func.func @transform_2(%arg0: i32, %arg1: i32) -> (i32, i32) {
    %c0_i32 = arith.constant 0 : i32
    %c0_i32_0 = arith.constant 0 : i32
    %c0_i32_1 = arith.constant 0 : i32
    return %c0_i32, %c0_i32_0 : i32, i32
  }
  func.func @transform_3(%arg0: i32, %arg1: i32) -> (i32, i32) {
    %c0_i32 = arith.constant 0 : i32
    %c0_i32_0 = arith.constant 0 : i32
    %c0_i32_1 = arith.constant 0 : i32
    return %c0_i32, %c0_i32_0 : i32, i32
  }
  func.func @transform_4(%arg0: i32, %arg1: i32) -> (i32, i32) {
    %c0_i32 = arith.constant 0 : i32
    %c0_i32_0 = arith.constant 0 : i32
    %c0_i32_1 = arith.constant 0 : i32
    return %c0_i32, %c0_i32_0 : i32, i32
  }
  func.func @transform_5(%arg0: i32, %arg1: i32) -> (i32, i32) {
    %c0_i32 = arith.constant 0 : i32
    %c0_i32_0 = arith.constant 0 : i32
    %c0_i32_1 = arith.constant 0 : i32
    return %c0_i32, %c0_i32_0 : i32, i32
  }
  func.func @transform_6(%arg0: i32, %arg1: i32) -> (i32, i32) {
    %c0_i32 = arith.constant 0 : i32
    %c0_i32_0 = arith.constant 0 : i32
    %c0_i32_1 = arith.constant 0 : i32
    return %c0_i32, %c0_i32_0 : i32, i32
  }
  func.func @transform_7(%arg0: i32, %arg1: i32) -> (i32, i32) {
    %c0_i32 = arith.constant 0 : i32
    %c0_i32_0 = arith.constant 0 : i32
    %c0_i32_1 = arith.constant 0 : i32
    return %c0_i32, %c0_i32_0 : i32, i32
  }
  func.func @transform_8(%arg0: i32, %arg1: i32) -> (i32, i32) {
    %c0_i32 = arith.constant 0 : i32
    %c0_i32_0 = arith.constant 0 : i32
    %c0_i32_1 = arith.constant 0 : i32
    return %c0_i32, %c0_i32_0 : i32, i32
  }
  func.func @transform_9(%arg0: i32, %arg1: i32) -> (i32, i32, i32) {
    %0 = arith.muli %arg1, %arg0 : i32
    %c0_i32 = arith.constant 0 : i32
    %c0_i32_0 = arith.constant 0 : i32
    %c0_i32_1 = arith.constant 0 : i32
    return %0, %c0_i32, %c0_i32_0 : i32, i32, i32
  }
}

</mosaic_0001>

<bundles_post_ra>
// kernel: attention_normalization_forward.1
= control target key start
LH: loop header
LB: loop body
LE: loop exit
PB: predicated region body
PF: predicated region fallthrough
CT: control target
= control target key end

     0   :  { %s2500_s30 = smov 0   ;;  %s2502_s10 = smov 0   ;;  %s3259_s0 = inlined_call_operand.vmem [shape: f32[2,16,256], index: 0, kind: input, shape index: {}]   ;;  %s3260_s1 = inlined_call_operand.vmem [shape: f32[2,16,256], index: 1, kind: input, shape index: {}]   ;;  %s3261_s2 = inlined_call_operand.vmem [shape: f32[9,256], index: 2, kind: input, shape index: {}]   ;;  %s3262_s3 = inlined_call_operand.vmem [shape: bf16[16,144], index: 3, kind: input, shape index: {}]   ;;  %s3263_s4 = inlined_call_operand.vmem [shape: f32[16,1], index: 4, kind: input, shape index: {}]   ;;  %s3264_s5 = inlined_call_operand.vmem [shape: bf16[32,144], index: 5, kind: input, shape index: {}]   ;;  %s3265_s6 = inlined_call_operand.vmem [shape: f32[32,1], index: 6, kind: input, shape index: {}]   ;;  %s3266_s7 = inlined_call_operand.vmem [shape: bf16[16,144], index: 7, kind: input, shape index: {}]   ;;  %s3267_s8 = inlined_call_operand.vmem [shape: f32[16,1], index: 8, kind: input, shape index: {}]   ;;  %s3268_s9 = inlined_call_operand.vmem [shape: f32[2,32,256], index: 9, kind: output, shape index: {}]  }
   0x1   :  { %s2504_s11 = smov 0   ;;  %s2506_s12 = smov 0  }
   0x2   :  { %s2508_s13 = smov 0  }
   0x3 LB: > { %s28_s14 = sadd.s32 1, %s2430_s11  ;;  %s31_s15 = sadd.s32 1, %s2434_s12  ;;  %s2438_s13 = sphi %s2508_s13, %s19_s13   ;;  %s2434_s12 = sphi %s2506_s12, %s3275_s12   ;;  %s2430_s11 = sphi %s2504_s11, %s3274_s11   ;;  %s2426_s10 = sphi %s2502_s10, %s3273_s10   ;;  %s2422_s30 = sphi %s2500_s30, %s3272_s30  }
   0x4   : > { %p29_p0 = scmp.ge.s32.totalorder %s28_s14, 2  ;;  %p1968_p1 = scmp.ge.s32.totalorder %s2438_s13, 1 }
   0x5   : > { %p315_p2 = scmp.lt.s32.totalorder %s2438_s13, 5 }
   0x6   : > { %s3277_s14 = smov (%p29_p0, %s28_s14), 0  ;;  %s3279_s15 = smov (!%p29_p0, %s31_s15), %s2434_s12 }
   0x7   : > { %p316_p3 = pnand %p1968_p1, %p315_p2  ;;  %p33_p4 = scmp.ge.s32.totalorder %s3279_s15, 2 }
   0x8   : > { %p358_p5 = scmp.lt.s32.totalorder (!%p316_p3), %s2422_s30, 1  ;;  %s363_s16 = smul.u32 (!%p316_p3), %s2422_s30, %s2426_s10 }
   0x9   : > { %s3281_s15 = smov (%p33_p4, %s3279_s15), 0  ;;  %319 = sbr.rel (%p316_p3) target bundleno = 1292 (0x50c), region = 56 }
   0xa   : > { %p364_p6 = scmp.lt.s32.totalorder (!%p316_p3), %s363_s16, 1  ;;  %p1975_p7 = scmp.ne.s32.totalorder (!%p316_p3), %s2426_s10, 0 }
   0xe   : > { %s359_s17 = scalar_select %p358_p5, %s2422_s30, 1 }
   0xf   : > { %s3283_s16 = smov (!%p364_p6, %s363_s16), 1  ;;  %381 = sbr.rel (%p1975_p7) target bundleno = 197 (0xc5), region = 60 }
  0x10   : > { %s2262_s18 = sshll.u32 %s359_s17, 5  ;;  %s2263_s22 = sshll.u32 %s3283_s16, 5 }
  0x11   : > { %s2541_s21 = scalar_lea.vmem %s3259_s0, %s2262_s18  ;;  %s2264_s23 = sshll.u32 %s3283_s16, 6 }
  0x12   : > { %s2546_s26 = scalar_lea.vmem %s3260_s1, %s2263_s22  ;;  %s2551_s29 = scalar_lea.vmem %s3268_s9, %s2264_s23 }
  0x13   : > { %p1976_p8 = scmp.ne.s32.totalorder (!%p1975_p7), %s2422_s30, 0 }
  0x15   : > { %385 = sbr.rel (%p1976_p8) target bundleno = 31 (0x1f), region = 64 }
  0x1a   : > { %vm386_vm0 = vcmask 7168   ;;  %v2440_v0 = vmov 0.0  }
  0x1b   : > { %387 = vst.msk [vmem:[#allocation2] sm:$0xff] %vm386_vm0, %v2440_v0 }
  0x1c   : > { %388 = vst.msk [vmem:[#allocation2 + $0x8] sm:$0xff] %vm386_vm0, %v2440_v0 }
  0x1d   : > { %389 = vst.msk [vmem:[#allocation3] sm:$0xff] %vm386_vm0, %v2440_v0 }
  0x1e   : > { %390 = vst.msk [vmem:[#allocation3 + $0x8] sm:$0xff] %vm386_vm0, %v2440_v0 }
  0x1f PF: > { %v391_v1 = vld [vmem:[%s2541_s21] sm:$0xff]  ;;  %v392_v2 = vld [vmem:[%s2541_s21 + $0x8] sm:$0xff]  ;;  %v393_v6 = vld [vmem:[%s2541_s21 + $0x10] sm:$0xff]  ;;  %vm405_vm1 = vcmask 7168   ;;  %p1977_p9 = scmp.ne.s32.totalorder %s2422_s30, 1 }
  0x20   : > { %v410_v3 = vmul.f32 %v391_v1, %v391_v1  ;;  %v411_v4 = vmul.f32 %v392_v2, %v392_v2  ;;  %v397_v5 = vadd.f32 %v392_v2, %v391_v1  ;;  %v394_v7 = vld [vmem:[%s2541_s21 + $0x18] sm:$0xff]  ;;  %v412_v9 = vmul.f32 %v393_v6, %v393_v6 }
  0x21   : > { %v413_v10 = vmul.f32 %v394_v7, %v394_v7  ;;  %v400_v11 = vadd.f32 %v394_v7, %v393_v6 }
  0x22   : > { %v414_v8 = vadd.f32 %v411_v4, %v410_v3  ;;  %398 = vadd.xlane.f32.xlu0 %v397_v5  ;;  %v395_v13 = vld [vmem:[#allocation2] sm:$0xff] }
  0x23   : > { %v417_v12 = vadd.f32 %v413_v10, %v412_v9  ;;  %v396_v19 = vld [vmem:[#allocation2 + $0x8] sm:$0xff] }
  0x24   : > { %415 = vadd.xlane.f32.xlu1 %v414_v8  ;;  %v408_v14 = vld [vmem:[#allocation3] sm:$0xff] }
  0x25   : > { %v409_v20 = vld [vmem:[#allocation3 + $0x8] sm:$0xff] }
  0x2a   : > { %401 = vadd.xlane.f32.xlu0 %v400_v11 }
  0x2c   : > { %418 = vadd.xlane.f32.xlu1 %v417_v12 }
  0x95   : > { %v399_v15 = vpop.xlane.xlu0 %398 }
  0x96   : > { %v403_v16 = vadd.f32 %v399_v15, %v395_v13 }
  0x97   : > { %v416_v17 = vpop.xlane.xlu1 %415 }
  0x98   : > { %v420_v18 = vadd.f32 %v416_v17, %v408_v14  ;;  %406 = vst.msk [vmem:[#allocation2] sm:$0xff] %vm405_vm1, %v403_v16 }
  0x9a   : > { %422 = vst.msk [vmem:[#allocation3] sm:$0xff] %vm405_vm1, %v420_v18 }
  0x9d   : > { %v402_v21 = vpop.xlane.xlu0 %401 }
  0x9e   : > { %v404_v22 = vadd.f32 %v402_v21, %v396_v19  ;;  %427 = sbr.rel (%p1977_p9) target bundleno = 197 (0xc5), region = 68 }
  0x9f   : > { %v419_v23 = vpop.xlane.xlu1 %418 }
  0xa0   : > { %v421_v24 = vadd.f32 %v419_v23, %v409_v20  ;;  %407 = vst.msk [vmem:[#allocation2 + $0x8] sm:$0xff] %vm405_vm1, %v404_v22 }
  0xa2   : > { %423 = vst.msk [vmem:[#allocation3 + $0x8] sm:$0xff] %vm405_vm1, %v421_v24 }
  0xa3   : > { %v428_v25 = vld [vmem:[#allocation2] sm:$0xff]  ;;  %v432_v27 = vld [vmem:[#allocation3] sm:$0xff] }
  0xa4   : > { %v430_v28 = vmul.f32 0.001953125, %v428_v25  ;;  %v434_v30 = vmul.f32 0.001953125, %v432_v27 }
  0xa6   : > { %v436_v33 = vmul.f32 %v430_v28, %v430_v28  ;;  %442 = vst.msk [vmem:[#allocation2] sm:$0xff] %vm405_vm1, %v430_v28 }
  0xa7   : > { %v429_v26 = vld [vmem:[#allocation2 + $0x8] sm:$0xff] }
  0xa8   : > { %v431_v29 = vmul.f32 0.001953125, %v429_v26  ;;  %v438_v35 = vsub.f32 %v434_v30, %v436_v33 }
  0xa9   : > { %v433_v31 = vld [vmem:[#allocation3 + $0x8] sm:$0xff] }
  0xaa   : > { %v435_v32 = vmul.f32 0.001953125, %v433_v31  ;;  %v437_v34 = vmul.f32 %v431_v29, %v431_v29  ;;  %443 = vst.msk [vmem:[#allocation2 + $0x8] sm:$0xff] %vm405_vm1, %v431_v29  ;;  %v440_v37 = vmax.f32 %v438_v35, 0.0 }
  0xac   : > { %v439_v36 = vsub.f32 %v435_v32, %v437_v34  ;;  %v444_v39 = vadd.f32 1e-05, %v440_v37 }
  0xae   : > { %v441_v38 = vmax.f32 %v439_v36, 0.0  ;;  %2377 = vrsqrt.f32 %v444_v39  ;;  %vm452_vm2 = vweird.f32 %v444_v39 }
  0xb0   : > { %v445_v40 = vadd.f32 1e-05, %v441_v38 }
  0xb2   : > { %2379 = vrsqrt.f32 %v445_v40  ;;  %vm462_vm4 = vweird.f32 %v445_v40 }
  0xb4   : > { %v2378_v41 = vpop.eup %2377 }
  0xb5   : > { %v447_v43 = vmul.f32 %v2378_v41, %v444_v39  ;;  %vm453_vm3 = vweird.f32 %v2378_v41 }
  0xb6   : > { %vm454_vm6 = vmor %vm452_vm2, %vm453_vm3 }
  0xb7   : > { %v448_v45 = vmul.f32 %v2378_v41, %v447_v43 }
  0xb8   : > { %v2380_v42 = vpop.eup %2379 }
  0xb9   : > { %v457_v44 = vmul.f32 %v2380_v42, %v445_v40  ;;  %v449_v47 = vmul.f32 0.5, %v448_v45  ;;  %vm463_vm5 = vweird.f32 %v2380_v42 }
  0xba   : > { %vm464_vm7 = vmor %vm462_vm4, %vm463_vm5 }
  0xbb   : > { %v458_v46 = vmul.f32 %v2380_v42, %v457_v44  ;;  %v450_v49 = vsub.f32 1.5, %v449_v47 }
  0xbd   : > { %v459_v48 = vmul.f32 0.5, %v458_v46  ;;  %v451_v51 = vmul.f32 %v2378_v41, %v450_v49 }
  0xbf   : > { %v460_v50 = vsub.f32 1.5, %v459_v48  ;;  %v455_v53 = vsel %vm454_vm6, %v2378_v41, %v451_v51 }
  0xc0   : > { %466 = vst.msk [vmem:[#allocation3] sm:$0xff] %vm405_vm1, %v455_v53 }
  0xc1   : > { %v461_v52 = vmul.f32 %v2380_v42, %v460_v50 }
  0xc3   : > { %v465_v54 = vsel %vm464_vm7, %v2380_v42, %v461_v52 }
  0xc4   : > { %467 = vst.msk [vmem:[#allocation3 + $0x8] sm:$0xff] %vm405_vm1, %v465_v54 }
  0xc5 PF: > { %p1978_p10 = scmp.ne.s32.totalorder %s2426_s10, 1 }
  0xc6   : > { %s2441_s30 = smov (!%p1978_p10), 112   ;;  %s2442_s16 = smov (!%p1978_p10), 113  }
  0xc7   : > { %471 = sbr.rel (%p1978_p10) target bundleno = 1292 (0x50c), region = 72  ;;  %s2443_s10 = smov (!%p1978_p10), 127  }
  0xc8   : > { %s2444_s17 = smov (!%p1978_p10), 1   ;;  %s2445_s18 = smov (!%p1978_p10), 15  }
  0xc9   : > { %s2446_s19 = smov (!%p1978_p10), 16   ;;  %s2447_s20 = smov (!%p1978_p10), 17  }
  0xca   : > { %s2448_s22 = smov (!%p1978_p10), 111  }
  0xcc   : > { %v2570_v55 = vld [vmem:[%s2546_s26 + $0x8] sm:$0xff]  ;;  %v2573_v56 = vld [vmem:[%s2546_s26] sm:$0xff]  ;;  %v2582_v57 = vld [vmem:[%s2546_s26 + $0x18] sm:$0xff]  ;;  %v520_v60 = vlaneseq  ;;  %vm3269_vm0 = vcmask 130048  }
  0xcd   : > { %689 = vrot.lane.b32.xlu1 %v2570_v55, %s2441_s30  ;;  %685 = vrot.lane.b32.xlu0 %v2573_v56, %s2441_s30  ;;  %v2585_v58 = vld [vmem:[%s2546_s26 + $0x10] sm:$0xff]  ;;  %v1984_v63 = vld [vmem:[%s3261_s2 + $0x7] ss:$8 sm:$0x3]  ;;  %v625_v14 = vpack.c.bf16 %v2570_v55, %v2573_v56 }
  0xce   : > { %657 = vrot.lane.b32.xlu2 %v2573_v56, %s2442_s16  ;;  %v2645_v62 = vand.u32 127, %v520_v60  ;;  %v701_v0 = vperm.slane %v1984_v63, 0  ;;  %v702_v1 = vperm.slane %v1984_v63, 1  ;;  %v626_v15 = vpack.c.bf16 %v2582_v57, %v2585_v58  ;;  %v1983_v18 = vld [vmem:[%s3261_s2 + $0x6] ss:$8 sm:$0x3] }
  0xcf   : > { %627 = vst [vmem:[#allocation4 + $0x40] sm:$0xff] %v625_v14  ;;  %v673_v21 = vperm.slane %v1983_v18, 0  ;;  %v674_v22 = vperm.slane %v1983_v18, 1  ;;  %v1982_v33 = vld [vmem:[%s3261_s2 + $0x5] ss:$8 sm:$0x3] }
  0xd0   : > { %vm693_vm8 = vcmp.lt.s32.totalorder %v2645_v62, 112  ;;  %628 = vst [vmem:[#allocation4 + $0x48] sm:$0xff] %v626_v15  ;;  %vm665_vm9 = vcmp.lt.s32.totalorder %v2645_v62, 113  ;;  %vm637_vm10 = vcmp.lt.s32.totalorder %v2645_v62, 127  ;;  %v645_v41 = vperm.slane %v1982_v33, 0 }
  0xd1   : > { %v646_v42 = vperm.slane %v1982_v33, 1  ;;  %vm605_vm11 = vcmp.lt.s32.totalorder %v2645_v62, 1  ;;  %vm577_vm12 = vcmp.lt.s32.totalorder %v2645_v62, 15  ;;  %vm549_vm13 = vcmp.lt.s32.totalorder %v2645_v62, 16 }
  0xd2   : > { %vm522_vm14 = vcmp.lt.s32.totalorder %v2645_v62, 17  ;;  %vm721_vm15 = vcmp.lt.s32.totalorder %v2645_v62, 111 }
  0xd5   : > { %691 = vrot.lane.b32.xlu1 %v2582_v57, %s2441_s30  ;;  %687 = vrot.lane.b32.xlu0 %v2585_v58, %s2441_s30 }
  0xd6   : > { %659 = vrot.lane.b32.xlu2 %v2585_v58, %s2442_s16 }
  0xdd   : > { %663 = vrot.lane.b32.xlu1 %v2582_v57, %s2442_s16  ;;  %661 = vrot.lane.b32.xlu0 %v2570_v55, %s2442_s16 }
  0xde   : > { %629 = vrot.lane.b32.xlu2 %v2573_v56, %s2443_s10 }
  0xe5   : > { %633 = vrot.lane.b32.xlu1 %v2570_v55, %s2443_s10  ;;  %631 = vrot.lane.b32.xlu0 %v2585_v58, %s2443_s10 }
  0xe6   : > { %635 = vrot.lane.b32.xlu2 %v2582_v57, %s2443_s10 }
  0xed   : > { %599 = vrot.lane.b32.xlu1 %v2585_v58, %s2444_s17  ;;  %597 = vrot.lane.b32.xlu0 %v2573_v56, %s2444_s17 }
  0xee   : > { %601 = vrot.lane.b32.xlu2 %v2570_v55, %s2444_s17 }
  0xf5   : > { %569 = vrot.lane.b32.xlu1 %v2573_v56, %s2445_s18  ;;  %603 = vrot.lane.b32.xlu0 %v2582_v57, %s2444_s17 }
  0xf6   : > { %571 = vrot.lane.b32.xlu2 %v2585_v58, %s2445_s18 }
  0xfd   : > { %575 = vrot.lane.b32.xlu1 %v2582_v57, %s2445_s18  ;;  %573 = vrot.lane.b32.xlu0 %v2570_v55, %s2445_s18 }
  0xfe   : > { %541 = vrot.lane.b32.xlu2 %v2573_v56, %s2446_s19 }
 0x105   : > { %545 = vrot.lane.b32.xlu1 %v2570_v55, %s2446_s19  ;;  %543 = vrot.lane.b32.xlu0 %v2585_v58, %s2446_s19 }
 0x106   : > { %547 = vrot.lane.b32.xlu2 %v2582_v57, %s2446_s19 }
 0x10d   : > { %514 = vrot.lane.b32.xlu1 %v2585_v58, %s2447_s20  ;;  %512 = vrot.lane.b32.xlu0 %v2573_v56, %s2447_s20 }
 0x10e   : > { %516 = vrot.lane.b32.xlu2 %v2570_v55, %s2447_s20 }
 0x115   : > { %713 = vrot.lane.b32.xlu1 %v2573_v56, %s2448_s22  ;;  %518 = vrot.lane.b32.xlu0 %v2582_v57, %s2447_s20 }
 0x116   : > { %715 = vrot.lane.b32.xlu2 %v2585_v58, %s2448_s22 }
 0x11d   : > { %719 = vrot.lane.b32.xlu1 %v2582_v57, %s2448_s22  ;;  %717 = vrot.lane.b32.xlu0 %v2570_v55, %s2448_s22  ;;  %v1981_v55 = vld [vmem:[%s3261_s2 + $0x3] ss:$8 sm:$0x3] }
 0x11e   : > { %v613_v60 = vperm.slane %v1981_v55, 0 }
 0x128   : > { %v658_v59 = vpop.permute.xlu2 %657 }
 0x130   : > { %v660_v61 = vpop.permute.xlu2 %659 }
 0x138   : > { %v630_v6 = vpop.permute.xlu2 %629 }
 0x13f   : > { %v690_v2 = vpop.permute.xlu1 %689  ;;  %v686_v3 = vpop.permute.xlu0 %685 }
 0x140   : > { %v694_v4 = vsel %vm693_vm8, %v686_v3, %v690_v2  ;;  %v696_v5 = vsel %vm693_vm8, %v690_v2, %v686_v3  ;;  %v636_v19 = vpop.permute.xlu2 %635 }
 0x141   : > { %v705_v7 = vmul.f32 %v701_v0, %v694_v4  ;;  %v706_v8 = vmul.f32 %v702_v1, %v696_v5 }
 0x143   : > { %v709_v9 = vpack.c.bf16 %v706_v8, %v705_v7 }
 0x145   : > { %711 = vst [vmem:[#allocation4 + $0x70] sm:$0xff] %v709_v9 }
 0x147   : > { %v692_v10 = vpop.permute.xlu1 %691  ;;  %v688_v11 = vpop.permute.xlu0 %687 }
 0x148   : > { %v695_v12 = vsel %vm693_vm8, %v688_v11, %v692_v10  ;;  %v697_v13 = vsel %vm693_vm8, %v692_v10, %v688_v11  ;;  %v602_v40 = vpop.permute.xlu2 %601  ;;  %v2028_v11 = vld [vmem:[#allocation4 + $0x40] sm:$0xf] }
 0x149   : > { %v707_v16 = vmul.f32 %v701_v0, %v695_v12  ;;  %v708_v17 = vmul.f32 %v702_v1, %v697_v13  ;;  %v614_v0 = vperm.slane %v1981_v55, 1  ;;  %v2276_v12 = vld [vmem:[#allocation4 + $0x44] sm:$0xf0]  ;;  %v2275_v13 = vld [vmem:[#allocation4 + $0x44] sm:$0xf] }
 0x14b   : > { %v710_v20 = vpack.c.bf16 %v708_v17, %v707_v16  ;;  %v2030_v16 = vld [vmem:[#allocation4 + $0x48] sm:$0xf0] }
 0x14c   : > { %v2052_v36 = vld [vmem:[#allocation4 + $0x70] sm:$0xf]  ;;  %v2281_v38 = vld [vmem:[#allocation4 + $0x74] sm:$0xf] }
 0x14d   : > { %712 = vst [vmem:[#allocation4 + $0x78] sm:$0xff] %v710_v20 }
 0x14f   : > { %v664_v23 = vpop.permute.xlu1 %663  ;;  %v662_v24 = vpop.permute.xlu0 %661 }
 0x150   : > { %v667_v25 = vsel %vm665_vm9, %v660_v61, %v664_v23  ;;  %v669_v26 = vsel %vm665_vm9, %v664_v23, %v660_v61  ;;  %v666_v27 = vsel %vm665_vm9, %v658_v59, %v662_v24  ;;  %v668_v28 = vsel %vm665_vm9, %v662_v24, %v658_v59  ;;  %v572_v3 = vpop.permute.xlu2 %571 }
 0x151   : > { %v679_v29 = vmul.f32 %v673_v21, %v667_v25  ;;  %v680_v30 = vmul.f32 %v674_v22, %v669_v26  ;;  %v677_v31 = vmul.f32 %v673_v21, %v666_v27  ;;  %v678_v32 = vmul.f32 %v674_v22, %v668_v28 }
 0x152   : > { %v2029_v23 = vor.u32 %v2276_v12, %v2028_v11  ;;  %v2033_v26 = vor.u32 %v2275_v13, %v2030_v16 }
 0x153   : > { %v682_v34 = vpack.c.bf16 %v680_v30, %v679_v29  ;;  %v681_v35 = vpack.c.bf16 %v678_v32, %v677_v31  ;;  %v1980_v30 = vld [vmem:[%s3261_s2 + $0x2] ss:$8 sm:$0x3] }
 0x154   : > { %v2282_v37 = vld [vmem:[#allocation4 + $0x74] sm:$0xf0]  ;;  %v2054_v39 = vld [vmem:[#allocation4 + $0x78] sm:$0xf0]  ;;  %v585_v32 = vperm.slane %v1980_v30, 0  ;;  %v586_v33 = vperm.slane %v1980_v30, 1 }
 0x155   : > { %684 = vst [vmem:[#allocation4 + $0x68] sm:$0xff] %v682_v34  ;;  %v2053_v43 = vor.u32 %v2282_v37, %v2052_v36  ;;  %v2057_v44 = vor.u32 %v2281_v38, %v2054_v39 }
 0x156   : > { %683 = vst [vmem:[#allocation4 + $0x60] sm:$0xff] %v681_v35 }
 0x157   : > { %v634_v45 = vpop.permute.xlu1 %633  ;;  %876 = vmatpush.bf16.msra.mxu0 %v2053_v43  ;;  %904 = vmatpush.bf16.msra.mxu2 %v2057_v44  ;;  %v632_v46 = vpop.permute.xlu0 %631  ;;  %v1979_v44 = vld [vmem:[%s3261_s2 + $0x1] ss:$8 sm:$0x3] }
 0x158   : > { %v638_v47 = vsel %vm637_vm10, %v630_v6, %v634_v45  ;;  %v640_v48 = vsel %vm637_vm10, %v634_v45, %v630_v6  ;;  %v639_v49 = vsel %vm637_vm10, %v632_v46, %v636_v19  ;;  %v641_v50 = vsel %vm637_vm10, %v636_v19, %v632_v46  ;;  %v542_v29 = vpop.permute.xlu2 %541 }
 0x159   : > { %v649_v51 = vmul.f32 %v645_v41, %v638_v47  ;;  %v650_v52 = vmul.f32 %v646_v42, %v640_v48  ;;  %v651_v53 = vmul.f32 %v645_v41, %v639_v49  ;;  %v652_v54 = vmul.f32 %v646_v42, %v641_v50 }
 0x15b   : > { %v653_v56 = vpack.c.bf16 %v650_v52, %v649_v51  ;;  %v654_v57 = vpack.c.bf16 %v652_v54, %v651_v53  ;;  %v557_v52 = vperm.slane %v1979_v44, 0  ;;  %v558_v53 = vperm.slane %v1979_v44, 1 }
 0x15c   : > { %v2280_v58 = vld [vmem:[#allocation4 + $0x64] sm:$0xf0]  ;;  %v2046_v59 = vld [vmem:[#allocation4 + $0x68] sm:$0xf0] }
 0x15d   : > { %655 = vst [vmem:[#allocation4 + $0x50] sm:$0xff] %v653_v56  ;;  %v2044_v61 = vld [vmem:[#allocation4 + $0x60] sm:$0xf]  ;;  %v2279_v63 = vld [vmem:[#allocation4 + $0x64] sm:$0xf] }
 0x15e   : > { %656 = vst [vmem:[#allocation4 + $0x58] sm:$0xff] %v654_v57  ;;  %v2045_v1 = vor.u32 %v2280_v58, %v2044_v61  ;;  %v2049_v2 = vor.u32 %v2279_v63, %v2046_v59 }
 0x15f   : > { %v600_v4 = vpop.permute.xlu1 %599  ;;  %v598_v5 = vpop.permute.xlu0 %597 }
 0x160   : > { %877 = vmatpush.bf16.msra.mxu0 %v2045_v1  ;;  %905 = vmatpush.bf16.msra.mxu2 %v2049_v2  ;;  %v606_v6 = vsel %vm605_vm11, %v598_v5, %v602_v40  ;;  %v608_v7 = vsel %vm605_vm11, %v602_v40, %v598_v5  ;;  %v548_v47 = vpop.permute.xlu2 %547 }
 0x161   : > { %v617_v8 = vmul.f32 %v613_v60, %v608_v7  ;;  %v618_v9 = vmul.f32 %v614_v0, %v606_v6 }
 0x163   : > { %v621_v10 = vpack.c.bf16 %v618_v9, %v617_v8 }
 0x164   : > { %v2036_v14 = vld [vmem:[#allocation4 + $0x50] sm:$0xf]  ;;  %v2277_v15 = vld [vmem:[#allocation4 + $0x54] sm:$0xf] }
 0x165   : > { %623 = vst [vmem:[#allocation4 + $0x30] sm:$0xff] %v621_v10  ;;  %v2278_v17 = vld [vmem:[#allocation4 + $0x54] sm:$0xf0]  ;;  %v2038_v18 = vld [vmem:[#allocation4 + $0x58] sm:$0xf0] }
 0x166   : > { %v2037_v19 = vor.u32 %v2278_v17, %v2036_v14  ;;  %v2041_v20 = vor.u32 %v2277_v15, %v2038_v18 }
 0x167   : > { %v570_v21 = vpop.permute.xlu1 %569  ;;  %v604_v22 = vpop.permute.xlu0 %603 }
 0x168   : > { %878 = vmatpush.bf16.msra.mxu0 %v2037_v19  ;;  %906 = vmatpush.bf16.msra.mxu2 %v2041_v20  ;;  %v607_v24 = vsel %vm605_vm11, %v600_v4, %v604_v22  ;;  %v609_v25 = vsel %vm605_vm11, %v604_v22, %v600_v4  ;;  %v517_v9 = vpop.permute.xlu2 %516  ;;  %v762_v22 = vld [vmem:[%s3263_s4 + $0x8] sm:$0xff] }
 0x169   : > { %v619_v27 = vmul.f32 %v613_v60, %v609_v25  ;;  %v620_v28 = vmul.f32 %v614_v0, %v607_v24 }
 0x16b   : > { %v622_v31 = vpack.c.bf16 %v620_v28, %v619_v27 }
 0x16c   : > { %879 = vmatpush.bf16.msra.mxu0 %v2029_v23  ;;  %907 = vmatpush.bf16.msra.mxu2 %v2033_v26  ;;  %v2020_v48 = vld [vmem:[#allocation4 + $0x30] sm:$0xf]  ;;  %v2273_v50 = vld [vmem:[#allocation4 + $0x34] sm:$0xf]  ;;  %v761_v23 = vld [vmem:[%s3263_s4] sm:$0xff]  ;;  %v2449_v26 = vmov 0  }
 0x16d   : > { %624 = vst [vmem:[#allocation4 + $0x38] sm:$0xff] %v622_v31  ;;  %2382 = vset.pattern.permute.xlu0 %v2449_v26  ;;  %2381 = vset.pattern.permute.xlu2 %v2449_v26 }
 0x16e   : > { %770 = vperm.xlu0 %2382, %v762_v22   ;;  %765 = vperm.xlu2 %2381, %v761_v23  }
 0x16f   : > { %v576_v34 = vpop.permute.xlu1 %575  ;;  %v574_v35 = vpop.permute.xlu0 %573  ;;  %2383 = vset.pattern.permute.xlu1 %v2449_v26 }
 0x170   : > { %v579_v36 = vsel %vm577_vm12, %v572_v3, %v576_v34  ;;  %v581_v37 = vsel %vm577_vm12, %v576_v34, %v572_v3  ;;  %v578_v38 = vsel %vm577_vm12, %v570_v21, %v574_v35  ;;  %v580_v39 = vsel %vm577_vm12, %v574_v35, %v570_v21  ;;  %v527_v3 = vld [vmem:[%s3261_s2] ss:$8 sm:$0x3] }
 0x171   : > { %v591_v40 = vmul.f32 %v585_v32, %v581_v37  ;;  %v592_v41 = vmul.f32 %v586_v33, %v579_v36  ;;  %v589_v42 = vmul.f32 %v585_v32, %v580_v39  ;;  %v590_v43 = vmul.f32 %v586_v33, %v578_v38  ;;  %v1985_v37 = vld [vmem:[%s3261_s2 + $0x10] ss:$8 sm:$0x3] }
 0x172   : > { %v529_v6 = vperm.slane %v527_v3, 0  ;;  %v530_v10 = vperm.slane %v527_v3, 1  ;;  %v729_v39 = vperm.slane %v1985_v37, 0  ;;  %v1990_v3 = vld [vmem:[%s3262_s3 + $0x8] sm:$0xf0] }
 0x173   : > { %v594_v45 = vpack.c.bf16 %v592_v41, %v591_v40  ;;  %v593_v46 = vpack.c.bf16 %v590_v43, %v589_v42  ;;  %v730_v40 = vperm.slane %v1985_v37, 1  ;;  %v716_v41 = vpop.permute.xlu2 %715 }
 0x174   : > { %v2274_v49 = vld [vmem:[#allocation4 + $0x34] sm:$0xf0]  ;;  %v2022_v51 = vld [vmem:[#allocation4 + $0x38] sm:$0xf0] }
 0x175   : > { %596 = vst [vmem:[#allocation4 + $0x28] sm:$0xff] %v594_v45  ;;  %v2021_v54 = vor.u32 %v2274_v49, %v2020_v48  ;;  %v2025_v55 = vor.u32 %v2273_v50, %v2022_v51 }
 0x176   : > { %595 = vst [vmem:[#allocation4 + $0x20] sm:$0xff] %v593_v46 }
 0x177   : > { %v546_v56 = vpop.permute.xlu1 %545  ;;  %v544_v57 = vpop.permute.xlu0 %543  ;;  %880 = vmatpush.bf16.msra.mxu0 %v2021_v54  ;;  %908 = vmatpush.bf16.msra.mxu2 %v2025_v55  ;;  %v1988_v55 = vld [vmem:[%s3262_s3] sm:$0xf] }
 0x178   : > { %v550_v58 = vsel %vm549_vm13, %v542_v29, %v546_v56  ;;  %v552_v59 = vsel %vm549_vm13, %v546_v56, %v542_v29  ;;  %v551_v60 = vsel %vm549_vm13, %v544_v57, %v548_v47  ;;  %v553_v61 = vsel %vm549_vm13, %v548_v47, %v544_v57  ;;  %v2266_v56 = vld [vmem:[%s3262_s3 + $0x4] sm:$0xf0] }
 0x179   : > { %v561_v63 = vmul.f32 %v557_v52, %v552_v59  ;;  %v562_v0 = vmul.f32 %v558_v53, %v550_v58  ;;  %v563_v1 = vmul.f32 %v557_v52, %v553_v61  ;;  %v564_v2 = vmul.f32 %v558_v53, %v551_v60 }
 0x17b   : > { %v565_v4 = vpack.c.bf16 %v562_v0, %v561_v63  ;;  %v566_v5 = vpack.c.bf16 %v564_v2, %v563_v1  ;;  %v1989_v63 = vor.u32 %v2266_v56, %v1988_v55  ;;  %v2265_v0 = vld [vmem:[%s3262_s3 + $0x4] sm:$0xf] }
 0x17c   : > { %v2272_v7 = vld [vmem:[#allocation4 + $0x24] sm:$0xf0]  ;;  %v2014_v8 = vld [vmem:[#allocation4 + $0x28] sm:$0xf0] }
 0x17d   : > { %567 = vst [vmem:[#allocation4 + $0x10] sm:$0xff] %v565_v4  ;;  %v2012_v11 = vld [vmem:[#allocation4 + $0x20] sm:$0xf]  ;;  %v2271_v12 = vld [vmem:[#allocation4 + $0x24] sm:$0xf] }
 0x17e   : > { %568 = vst [vmem:[#allocation4 + $0x18] sm:$0xff] %v566_v5  ;;  %v2013_v13 = vor.u32 %v2272_v7, %v2012_v11  ;;  %v2017_v14 = vor.u32 %v2271_v12, %v2014_v8  ;;  %v1993_v8 = vor.u32 %v2265_v0, %v1990_v3 }
 0x17f   : > { %v515_v15 = vpop.permute.xlu1 %514  ;;  %v513_v16 = vpop.permute.xlu0 %512 }
 0x180   : > { %v523_v17 = vsel %vm522_vm14, %v513_v16, %v517_v9  ;;  %v525_v18 = vsel %vm522_vm14, %v517_v9, %v513_v16  ;;  %881 = vmatpush.bf16.msra.mxu0 %v2013_v13  ;;  %909 = vmatpush.bf16.msra.mxu2 %v2017_v14 }
 0x181   : > { %v533_v19 = vmul.f32 %v529_v6, %v525_v18  ;;  %v534_v20 = vmul.f32 %v530_v10, %v523_v17 }
 0x183   : > { %v537_v21 = vpack.c.bf16 %v534_v20, %v533_v19 }
 0x184   : > { %v2004_v24 = vld [vmem:[#allocation4 + $0x10] sm:$0xf]  ;;  %v2269_v25 = vld [vmem:[#allocation4 + $0x14] sm:$0xf] }
 0x185   : > { %539 = vst [vmem:[#allocation4] sm:$0xff] %v537_v21  ;;  %v2270_v27 = vld [vmem:[#allocation4 + $0x14] sm:$0xf0]  ;;  %v2006_v28 = vld [vmem:[#allocation4 + $0x18] sm:$0xf0] }
 0x186   : > { %v2005_v29 = vor.u32 %v2270_v27, %v2004_v24  ;;  %v2009_v30 = vor.u32 %v2269_v25, %v2006_v28 }
 0x187   : > { %v714_v31 = vpop.permute.xlu1 %713  ;;  %v519_v32 = vpop.permute.xlu0 %518 }
 0x188   : > { %v524_v33 = vsel %vm522_vm14, %v515_v15, %v519_v32  ;;  %v526_v34 = vsel %vm522_vm14, %v519_v32, %v515_v15  ;;  %882 = vmatpush.bf16.msra.mxu0 %v2005_v29  ;;  %910 = vmatpush.bf16.msra.mxu2 %v2009_v30 }
 0x189   : > { %v535_v35 = vmul.f32 %v529_v6, %v526_v34  ;;  %v536_v36 = vmul.f32 %v530_v10, %v524_v33  ;;  %v472_v33 = vld [vmem:[#allocation2] sm:$0xff]  ;;  %v1171_v34 = vld [vmem:[%s3265_s6 + $0x8] sm:$0xff] }
 0x18b   : > { %v538_v38 = vpack.c.bf16 %v536_v36, %v535_v35  ;;  %v475_v35 = vld [vmem:[#allocation3 + $0x8] sm:$0xff]  ;;  %v1170_v36 = vld [vmem:[%s3265_s6] sm:$0xff] }
 0x18c   : > { %v1996_v54 = vld [vmem:[#allocation4] sm:$0xf]  ;;  %v2267_v58 = vld [vmem:[#allocation4 + $0x4] sm:$0xf] }
 0x18d   : > { %540 = vst [vmem:[#allocation4 + $0x8] sm:$0xff] %v538_v38  ;;  %v474_v38 = vld [vmem:[#allocation3] sm:$0xff] }
 0x18f   : > { %v720_v42 = vpop.permute.xlu1 %719  ;;  %v718_v43 = vpop.permute.xlu0 %717 }
 0x190   : > { %v723_v44 = vsel %vm721_vm15, %v716_v41, %v720_v42  ;;  %v725_v45 = vsel %vm721_vm15, %v720_v42, %v716_v41  ;;  %v722_v46 = vsel %vm721_vm15, %v714_v31, %v718_v43  ;;  %v724_v47 = vsel %vm721_vm15, %v718_v43, %v714_v31  ;;  %v1173_v41 = vld [vmem:[%s3265_s6 + $0x18] sm:$0xff]  ;;  %v2813_v43 = vld [vmem:[%s3261_s2 + $0x7] ss:$8 sm:$0x3] }
 0x191   : > { %v735_v48 = vmul.f32 %v729_v39, %v723_v44  ;;  %v736_v49 = vmul.f32 %v730_v40, %v725_v45  ;;  %v733_v50 = vmul.f32 %v729_v39, %v722_v46  ;;  %v734_v51 = vmul.f32 %v730_v40, %v724_v47  ;;  %v473_v39 = vld [vmem:[#allocation2 + $0x8] sm:$0xff] }
 0x192   : > { %v1110_v44 = vperm.slane %v2813_v43, 0  ;;  %v1111_v45 = vperm.slane %v2813_v43, 1 }
 0x193   : > { %v738_v52 = vpack.c.bf16 %v736_v49, %v735_v48  ;;  %v737_v53 = vpack.c.bf16 %v734_v51, %v733_v50 }
 0x194   : > { %v2268_v57 = vld [vmem:[#allocation4 + $0x4] sm:$0xf0]  ;;  %v1998_v59 = vld [vmem:[#allocation4 + $0x8] sm:$0xf0] }
 0x195   : > { %740 = vst [vmem:[#allocation4 + $0x88] sm:$0xff] %v738_v52  ;;  %v1997_v60 = vor.u32 %v2268_v57, %v1996_v54  ;;  %v2001_v61 = vor.u32 %v2267_v58, %v1998_v59 }
 0x196   : > { %739 = vst [vmem:[#allocation4 + $0x80] sm:$0xff] %v737_v53  ;;  %v2828_v53 = vld [vmem:[%s3261_s2 + $0x3] ss:$8 sm:$0x3] }
 0x197   : > { %883 = vmatpush.bf16.msra.mxu0 %v1997_v60  ;;  %911 = vmatpush.bf16.msra.mxu2 %v2001_v61  ;;  %v1028_v55 = vperm.slane %v2828_v53, 0  ;;  %v1029_v56 = vperm.slane %v2828_v53, 1 }
 0x19a   : > { %884 = vmatmul.bf16.vlgmr.msra.gmra.mxu0 %v1989_v63  ;;  %912 = vmatmul.bf16.vlgmr.msra.gmra.mxu2 %v1989_v63 }
 0x19c   : > { %v2284_v1 = vld [vmem:[#allocation4 + $0x84] sm:$0xf0]  ;;  %v2062_v2 = vld [vmem:[#allocation4 + $0x88] sm:$0xf0] }
 0x19d   : > { %v2060_v4 = vld [vmem:[#allocation4 + $0x80] sm:$0xf]  ;;  %v2283_v5 = vld [vmem:[#allocation4 + $0x84] sm:$0xf] }
 0x19e   : > { %v2061_v6 = vor.u32 %v2284_v1, %v2060_v4  ;;  %v2065_v7 = vor.u32 %v2283_v5, %v2062_v2  ;;  %v2845_v1 = vld [vmem:[%s3261_s2 + $0x6] ss:$8 sm:$0x3] }
 0x19f   : > { %v1084_v3 = vperm.slane %v2845_v1, 0  ;;  %v1085_v4 = vperm.slane %v2845_v1, 1 }
 0x1a0   : > { %897 = vmatpush.bf16.msra.mxu1 %v2061_v6  ;;  %925 = vmatpush.bf16.msra.mxu3 %v2065_v7 }
 0x1a3   : > { %2066 = vmatmul.msk.bf16.vlgmr.msra.gmra.mxu1 %vm3269_vm0, %v1993_v8  ;;  %2067 = vmatmul.msk.bf16.vlgmr.msra.gmra.mxu3 %vm3269_vm0, %v1993_v8 }
 0x1c8   : > { %v766_v9 = vpop.permute.xlu2 %765 }
 0x1e0   : > { %v771_v18 = vpop.permute.xlu0 %770 }
 0x217   : > { %v885_v10 = vpop.f32.mrf.mxu0 }
 0x218   : > { %v886_v11 = vadd.f32 %v885_v10, %v766_v9 }
 0x21d   : > { %v913_v12 = vpop.f32.mrf.mxu2 }
 0x21e   : > { %v914_v16 = vadd.f32 %v913_v12, %v766_v9  ;;  %v2074_v12 = vld [vmem:[%s3261_s2 + $0x10] ss:$8 sm:$0x3] }
 0x21f   : > { %v887_v20 = vpop.f32.mrf.mxu0 }
 0x220   : > { %v899_v13 = vpop.f32.mrf.mxu1  ;;  %v888_v24 = vadd.f32 %v887_v20, %v771_v18 }
 0x221   : > { %v900_v14 = vadd.f32 %v899_v13, %v886_v11  ;;  %v2865_v13 = vld [vmem:[%s3261_s2 + $0x2] ss:$8 sm:$0x3] }
 0x223   : > { %v932_v15 = vmax.f32 %v900_v14, 0.0 }
 0x225   : > { %1044 = vrot.lane.b32.xlu2 %v932_v15, %s2443_s10  ;;  %1096 = vrot.lane.b32.xlu0 %v932_v15, %s2441_s30  ;;  %v915_v21 = vpop.f32.mrf.mxu2 }
 0x226   : > { %1122 = vrot.lane.b32.xlu1 %v932_v15, %s2448_s22  ;;  %v927_v17 = vpop.f32.mrf.mxu3  ;;  %v916_v26 = vadd.f32 %v915_v21, %v771_v18  ;;  %v1003_v18 = vperm.slane %v2865_v13, 1 }
 0x227   : > { %v928_v19 = vadd.f32 %v927_v17, %v914_v16  ;;  %v1137_v16 = vperm.slane %v2074_v12, 1  ;;  %v1002_v17 = vperm.slane %v2865_v13, 0 }
 0x228   : > { %v901_v23 = vpop.f32.mrf.mxu1 }
 0x229   : > { %v933_v22 = vmax.f32 %v928_v19, 0.0  ;;  %v902_v27 = vadd.f32 %v901_v23, %v888_v24 }
 0x22b   : > { %v1040_v25 = vpack.c.bf16 %v933_v22, %v932_v15  ;;  %v934_v30 = vmax.f32 %v902_v27, 0.0 }
 0x22d   : > { %1042 = vst [vmem:[#allocation4 + $0x40] sm:$0xff] %v1040_v25  ;;  %1100 = vrot.lane.b32.xlu2 %v933_v22, %s2441_s30  ;;  %1014 = vrot.lane.b32.xlu0 %v932_v15, %s2444_s17 }
 0x22e   : > { %1070 = vrot.lane.b32.xlu1 %v932_v15, %s2442_s16  ;;  %v929_v28 = vpop.f32.mrf.mxu3 }
 0x22f   : > { %v930_v29 = vadd.f32 %v929_v28, %v916_v26 }
 0x231   : > { %v935_v31 = vmax.f32 %v930_v29, 0.0 }
 0x233   : > { %v1041_v32 = vpack.c.bf16 %v935_v31, %v934_v30 }
 0x235   : > { %1043 = vst [vmem:[#allocation4 + $0x48] sm:$0xff] %v1041_v32  ;;  %1018 = vrot.lane.b32.xlu2 %v933_v22, %s2444_s17  ;;  %1074 = vrot.lane.b32.xlu0 %v933_v22, %s2442_s16  ;;  %v2071_v32 = vld [vmem:[%s3261_s2 + $0x5] ss:$8 sm:$0x3] }
 0x236   : > { %988 = vrot.lane.b32.xlu1 %v932_v15, %s2445_s18 }
 0x23d   : > { %1124 = vrot.lane.b32.xlu2 %v934_v30, %s2448_s22  ;;  %992 = vrot.lane.b32.xlu0 %v933_v22, %s2445_s18 }
 0x23e   : > { %1126 = vrot.lane.b32.xlu1 %v933_v22, %s2448_s22 }
 0x245   : > { %1072 = vrot.lane.b32.xlu2 %v934_v30, %s2442_s16  ;;  %1046 = vrot.lane.b32.xlu0 %v934_v30, %s2443_s10 }
 0x246   : > { %1048 = vrot.lane.b32.xlu1 %v933_v22, %s2443_s10 }
 0x24d   : > { %990 = vrot.lane.b32.xlu2 %v934_v30, %s2445_s18  ;;  %1102 = vrot.lane.b32.xlu0 %v935_v31, %s2441_s30 }
 0x24e   : > { %1098 = vrot.lane.b32.xlu1 %v934_v30, %s2441_s30 }
 0x255   : > { %1128 = vrot.lane.b32.xlu2 %v935_v31, %s2448_s22  ;;  %964 = vrot.lane.b32.xlu0 %v934_v30, %s2446_s19 }
 0x256   : > { %1016 = vrot.lane.b32.xlu1 %v934_v30, %s2444_s17 }
 0x25d   : > { %1050 = vrot.lane.b32.xlu2 %v935_v31, %s2443_s10  ;;  %1020 = vrot.lane.b32.xlu0 %v935_v31, %s2444_s17 }
 0x25e   : > { %1076 = vrot.lane.b32.xlu1 %v935_v31, %s2442_s16 }
 0x265   : > { %962 = vrot.lane.b32.xlu2 %v932_v15, %s2446_s19  ;;  %936 = vrot.lane.b32.xlu0 %v932_v15, %s2447_s20  ;;  %v1136_v15 = vperm.slane %v2074_v12, 0 }
 0x266   : > { %966 = vrot.lane.b32.xlu1 %v933_v22, %s2446_s19 }
 0x26d   : > { %968 = vrot.lane.b32.xlu2 %v935_v31, %s2446_s19  ;;  %942 = vrot.lane.b32.xlu0 %v935_v31, %s2447_s20 }
 0x26e   : > { %994 = vrot.lane.b32.xlu1 %v935_v31, %s2445_s18 }
 0x275   : > { %940 = vrot.lane.b32.xlu2 %v933_v22, %s2447_s20  ;;  %482 = vperm.xlu0 %2382, %v472_v33  }
 0x276   : > { %938 = vrot.lane.b32.xlu1 %v934_v30, %s2447_s20 }
 0x27d   : > { %1181 = vperm.xlu2 %2381, %v1171_v34   ;;  %501 = vperm.xlu0 %2382, %v475_v35  }
 0x27e   : > { %1176 = vperm.xlu1 %2383, %v1170_v36  }
 0x27f   : > { %v2805_v37 = vpop.permute.xlu2 %1044 }
 0x285   : > { %496 = vperm.xlu2 %2381, %v474_v38  }
 0x286   : > { %487 = vperm.xlu1 %2383, %v473_v39   ;;  %v1058_v39 = vperm.slane %v2071_v32, 0 }
 0x287   : > { %v1101_v40 = vpop.permute.xlu2 %1100 }
 0x28d   : > { %1191 = vperm.xlu2 %2381, %v1173_v41  }
 0x28f   : > { %v1019_v42 = vpop.permute.xlu2 %1018 }
 0x297   : > { %v1125_v46 = vpop.permute.xlu2 %1124  ;;  %v1097_v47 = vpop.permute.xlu0 %1096 }
 0x298   : > { %v1104_v48 = vsel %vm693_vm8, %v1097_v47, %v1101_v40  ;;  %v1106_v49 = vsel %vm693_vm8, %v1101_v40, %v1097_v47  ;;  %v1123_v50 = vpop.permute.xlu1 %1122  ;;  %v1059_v40 = vperm.slane %v2071_v32, 1  ;;  %v2087_v32 = vld [vmem:[%s3264_s5 + $0x18] sm:$0xf0] }
 0x299   : > { %v1114_v51 = vmul.f32 %v1110_v44, %v1104_v48  ;;  %v1115_v52 = vmul.f32 %v1111_v45, %v1106_v49 }
 0x29b   : > { %v1118_v54 = vpack.c.bf16 %v1115_v52, %v1114_v51 }
 0x29d   : > { %1120 = vst [vmem:[#allocation4 + $0x70] sm:$0xff] %v1118_v54 }
 0x29f   : > { %v2832_v57 = vpop.permute.xlu2 %1072  ;;  %v1015_v58 = vpop.permute.xlu0 %1014 }
 0x2a0   : > { %v1022_v59 = vsel %vm605_vm11, %v1015_v58, %v1019_v42  ;;  %v1024_v60 = vsel %vm605_vm11, %v1019_v42, %v1015_v58  ;;  %v1071_v61 = vpop.permute.xlu1 %1070 }
 0x2a1   : > { %v1032_v63 = vmul.f32 %v1028_v55, %v1024_v60  ;;  %v1033_v0 = vmul.f32 %v1029_v56, %v1022_v59 }
 0x2a3   : > { %v1036_v2 = vpack.c.bf16 %v1033_v0, %v1032_v63  ;;  %v2285_v0 = vld [vmem:[%s3264_s5 + $0x4] sm:$0xf] }
 0x2a5   : > { %1038 = vst [vmem:[#allocation4 + $0x30] sm:$0xff] %v1036_v2  ;;  %v2079_v2 = vld [vmem:[%s3264_s5 + $0x8] sm:$0xf0] }
 0x2a6   : > { %v2082_v12 = vor.u32 %v2285_v0, %v2079_v2 }
 0x2a7   : > { %v2849_v5 = vpop.permute.xlu2 %990  ;;  %v1075_v6 = vpop.permute.xlu0 %1074 }
 0x2a8   : > { %v1078_v7 = vsel %vm665_vm9, %v1071_v61, %v1075_v6  ;;  %v1080_v8 = vsel %vm665_vm9, %v1075_v6, %v1071_v61  ;;  %v989_v9 = vpop.permute.xlu1 %988 }
 0x2a9   : > { %v1088_v10 = vmul.f32 %v1084_v3, %v1078_v7  ;;  %v1089_v11 = vmul.f32 %v1085_v4, %v1080_v8 }
 0x2ab   : > { %v1092_v14 = vpack.c.bf16 %v1089_v11, %v1088_v10 }
 0x2ad   : > { %1094 = vst [vmem:[#allocation4 + $0x60] sm:$0xff] %v1092_v14 }
 0x2af   : > { %v1129_v19 = vpop.permute.xlu2 %1128  ;;  %v993_v20 = vpop.permute.xlu0 %992 }
 0x2b0   : > { %v1131_v21 = vsel %vm721_vm15, %v1125_v46, %v1129_v19  ;;  %v1133_v22 = vsel %vm721_vm15, %v1129_v19, %v1125_v46  ;;  %v996_v23 = vsel %vm577_vm12, %v989_v9, %v993_v20  ;;  %v998_v24 = vsel %vm577_vm12, %v993_v20, %v989_v9  ;;  %v1127_v25 = vpop.permute.xlu1 %1126  ;;  %v2068_v20 = vld [vmem:[%s3261_s2 + $0x1] ss:$8 sm:$0x3] }
 0x2b1   : > { %v1142_v26 = vmul.f32 %v1136_v15, %v1131_v21  ;;  %v1143_v27 = vmul.f32 %v1137_v16, %v1133_v22  ;;  %v1006_v28 = vmul.f32 %v1002_v17, %v998_v24  ;;  %v1007_v29 = vmul.f32 %v1003_v18, %v996_v23 }
 0x2b2   : > { %v1130_v30 = vsel %vm721_vm15, %v1123_v50, %v1127_v25  ;;  %v1132_v31 = vsel %vm721_vm15, %v1127_v25, %v1123_v50  ;;  %v976_v22 = vperm.slane %v2068_v20, 0  ;;  %v977_v23 = vperm.slane %v2068_v20, 1 }
 0x2b3   : > { %v1145_v33 = vpack.c.bf16 %v1143_v27, %v1142_v26  ;;  %v1010_v34 = vpack.c.bf16 %v1007_v29, %v1006_v28  ;;  %v1140_v35 = vmul.f32 %v1136_v15, %v1130_v30  ;;  %v1141_v36 = vmul.f32 %v1137_v16, %v1132_v31  ;;  %v2149_v29 = vld [vmem:[#allocation4 + $0x70] sm:$0xf]  ;;  %v2303_v30 = vld [vmem:[#allocation4 + $0x74] sm:$0xf] }
 0x2b4   : > { %v2287_v31 = vld [vmem:[%s3264_s5 + $0x14] sm:$0xf] }
 0x2b5   : > { %1147 = vst [vmem:[#allocation4 + $0x88] sm:$0xff] %v1145_v33  ;;  %v1144_v38 = vpack.c.bf16 %v1141_v36, %v1140_v35 }
 0x2b6   : > { %1012 = vst [vmem:[#allocation4 + $0x20] sm:$0xff] %v1010_v34 }
 0x2b7   : > { %1146 = vst [vmem:[#allocation4 + $0x80] sm:$0xff] %v1144_v38  ;;  %v1051_v41 = vpop.permute.xlu2 %1050  ;;  %v1047_v42 = vpop.permute.xlu0 %1046 }
 0x2b8   : > { %v1053_v46 = vsel %vm637_vm10, %v1047_v42, %v1051_v41  ;;  %v1055_v47 = vsel %vm637_vm10, %v1051_v41, %v1047_v42  ;;  %v1049_v48 = vpop.permute.xlu1 %1048  ;;  %v2090_v42 = vor.u32 %v2287_v31, %v2087_v32  ;;  %v2297_v31 = vld [vmem:[#allocation4 + $0x44] sm:$0xf] }
 0x2b9   : > { %v1064_v49 = vmul.f32 %v1058_v39, %v1053_v46  ;;  %v1065_v50 = vmul.f32 %v1059_v40, %v1055_v47  ;;  %v1052_v51 = vsel %vm637_vm10, %v2805_v37, %v1049_v48  ;;  %v1054_v52 = vsel %vm637_vm10, %v1049_v48, %v2805_v37  ;;  %v476_v32 = vld [vmem:[%s2541_s21] sm:$0xff] }
 0x2ba   : > { %v1062_v54 = vmul.f32 %v1058_v39, %v1052_v51  ;;  %v1063_v58 = vmul.f32 %v1059_v40, %v1054_v52 }
 0x2bb   : > { %v1067_v59 = vpack.c.bf16 %v1065_v50, %v1064_v49 }
 0x2bc   : > { %v1066_v60 = vpack.c.bf16 %v1063_v58, %v1062_v54  ;;  %v2306_v61 = vld [vmem:[#allocation4 + $0x84] sm:$0xf0]  ;;  %v2159_v63 = vld [vmem:[#allocation4 + $0x88] sm:$0xf0] }
 0x2bd   : > { %1069 = vst [vmem:[#allocation4 + $0x58] sm:$0xff] %v1067_v59 }
 0x2be   : > { %1068 = vst [vmem:[#allocation4 + $0x50] sm:$0xff] %v1066_v60  ;;  %v2157_v6 = vld [vmem:[#allocation4 + $0x80] sm:$0xf]  ;;  %v2305_v7 = vld [vmem:[#allocation4 + $0x84] sm:$0xf] }
 0x2bf   : > { %v2904_v8 = vpop.permute.xlu2 %962  ;;  %v1103_v37 = vpop.permute.xlu0 %1102  ;;  %v2158_v9 = vor.u32 %v2306_v61, %v2157_v6  ;;  %v2162_v10 = vor.u32 %v2305_v7, %v2159_v63 }
 0x2c0   : > { %v1099_v11 = vpop.permute.xlu1 %1098 }
 0x2c1   : > { %1334 = vmatpush.bf16.msrb.mxu3 %v2158_v9  ;;  %1372 = vmatpush.bf16.msrb.mxu0 %v2162_v10  ;;  %v1105_v14 = vsel %vm693_vm8, %v1099_v11, %v1103_v37  ;;  %v1107_v15 = vsel %vm693_vm8, %v1103_v37, %v1099_v11  ;;  %v2141_v37 = vld [vmem:[#allocation4 + $0x60] sm:$0xf]  ;;  %v2301_v9 = vld [vmem:[#allocation4 + $0x64] sm:$0xf] }
 0x2c2   : > { %v1116_v16 = vmul.f32 %v1110_v44, %v1105_v14  ;;  %v1117_v19 = vmul.f32 %v1111_v45, %v1107_v15 }
 0x2c4   : > { %v1119_v21 = vpack.c.bf16 %v1117_v19, %v1116_v16  ;;  %2163 = vmatmul.msk.bf16.vlgmr.msrb.gmra.mxu3 %vm3269_vm0, %v2082_v12  ;;  %2165 = vmatmul.msk.bf16.vlgmr.msrb.gmra.mxu0 %vm3269_vm0, %v2082_v12  ;;  %v2300_v15 = vld [vmem:[#allocation4 + $0x54] sm:$0xf0]  ;;  %v1172_v16 = vld [vmem:[%s3265_s6 + $0x10] sm:$0xff] }
 0x2c5   : > { %v2133_v20 = vld [vmem:[#allocation4 + $0x50] sm:$0xf]  ;;  %1186 = vperm.xlu1 %2383, %v1172_v16  }
 0x2c6   : > { %1121 = vst [vmem:[#allocation4 + $0x78] sm:$0xff] %v1119_v21  ;;  %v2299_v21 = vld [vmem:[#allocation4 + $0x54] sm:$0xf] }
 0x2c7   : > { %v969_v24 = vpop.permute.xlu2 %968  ;;  %v965_v25 = vpop.permute.xlu0 %964 }
 0x2c8   : > { %v971_v44 = vsel %vm549_vm13, %v965_v25, %v969_v24  ;;  %v973_v43 = vsel %vm549_vm13, %v969_v24, %v965_v25  ;;  %v1017_v45 = vpop.permute.xlu1 %1016 }
 0x2c9   : > { %v982_v26 = vmul.f32 %v976_v22, %v973_v43  ;;  %v983_v27 = vmul.f32 %v977_v23, %v971_v44 }
 0x2cb   : > { %v985_v28 = vpack.c.bf16 %v983_v27, %v982_v26  ;;  %v2298_v27 = vld [vmem:[#allocation4 + $0x44] sm:$0xf0] }
 0x2cd   : > { %987 = vst [vmem:[#allocation4 + $0x18] sm:$0xff] %v985_v28  ;;  %v2304_v33 = vld [vmem:[#allocation4 + $0x74] sm:$0xf0]  ;;  %v2151_v34 = vld [vmem:[#allocation4 + $0x78] sm:$0xf0] }
 0x2ce   : > { %v2150_v35 = vor.u32 %v2304_v33, %v2149_v29  ;;  %v2154_v36 = vor.u32 %v2303_v30, %v2151_v34  ;;  %v2127_v28 = vld [vmem:[#allocation4 + $0x48] sm:$0xf0]  ;;  %v2125_v30 = vld [vmem:[#allocation4 + $0x40] sm:$0xf] }
 0x2cf   : > { %v1021_v38 = vpop.permute.xlu0 %1020  ;;  %v941_v52 = vpop.permute.xlu2 %940  ;;  %v477_v33 = vld [vmem:[%s2541_s21 + $0x8] sm:$0xff]  ;;  %v2126_v34 = vor.u32 %v2298_v27, %v2125_v30 }
 0x2d0   : > { %v1023_v39 = vsel %vm605_vm11, %v1017_v45, %v1021_v38  ;;  %v1025_v40 = vsel %vm605_vm11, %v1021_v38, %v1017_v45  ;;  %1308 = vmatpush.bf16.msrb.mxu1 %v2150_v35  ;;  %1346 = vmatpush.bf16.msra.mxu3 %v2154_v36  ;;  %v1077_v41 = vpop.permute.xlu1 %1076  ;;  %v2134_v45 = vor.u32 %v2300_v15, %v2133_v20  ;;  %v479_v15 = vld [vmem:[%s2541_s21 + $0x18] sm:$0xff] }
 0x2d1   : > { %v1034_v46 = vmul.f32 %v1028_v55, %v1025_v40  ;;  %v1035_v47 = vmul.f32 %v1029_v56, %v1023_v39  ;;  %v1079_v48 = vsel %vm665_vm9, %v2832_v57, %v1077_v41  ;;  %v1081_v49 = vsel %vm665_vm9, %v1077_v41, %v2832_v57  ;;  %v2950_v55 = vld [vmem:[%s3261_s2] ss:$8 sm:$0x3]  ;;  %v2117_v39 = vld [vmem:[#allocation4 + $0x30] sm:$0xf] }
 0x2d2   : > { %v1090_v50 = vmul.f32 %v1084_v3, %v1079_v48  ;;  %v1091_v51 = vmul.f32 %v1085_v4, %v1081_v49  ;;  %v950_v57 = vperm.slane %v2950_v55, 0  ;;  %v951_v3 = vperm.slane %v2950_v55, 1  ;;  %v2295_v40 = vld [vmem:[#allocation4 + $0x34] sm:$0xf] }
 0x2d3   : > { %v1037_v53 = vpack.c.bf16 %v1035_v47, %v1034_v46 }
 0x2d4   : > { %v1093_v56 = vpack.c.bf16 %v1091_v51, %v1090_v50  ;;  %2164 = vmatmul.msk.bf16.gmra.mxu3 %vm3269_vm0, %v2090_v42  ;;  %2166 = vmatmul.msk.bf16.gmra.mxu0 %vm3269_vm0, %v2090_v42 }
 0x2d5   : > { %1039 = vst [vmem:[#allocation4 + $0x38] sm:$0xff] %v1037_v53 }
 0x2d6   : > { %1095 = vst [vmem:[#allocation4 + $0x68] sm:$0xff] %v1093_v56 }
 0x2d7   : > { %v937_v1 = vpop.permute.xlu0 %936  ;;  %v2973_v19 = vpop.permute.xlu2 %1181 }
 0x2d8   : > { %v944_v4 = vsel %vm522_vm14, %v937_v1, %v941_v52  ;;  %v946_v54 = vsel %vm522_vm14, %v941_v52, %v937_v1  ;;  %v967_v58 = vpop.permute.xlu1 %966  ;;  %v2109_v52 = vld [vmem:[#allocation4 + $0x20] sm:$0xf]  ;;  %v2293_v1 = vld [vmem:[#allocation4 + $0x24] sm:$0xf] }
 0x2d9   : > { %v954_v59 = vmul.f32 %v950_v57, %v946_v54  ;;  %v955_v60 = vmul.f32 %v951_v3, %v944_v4  ;;  %v970_v61 = vsel %vm549_vm13, %v2904_v8, %v967_v58  ;;  %v972_v63 = vsel %vm549_vm13, %v967_v58, %v2904_v8 }
 0x2da   : > { %v980_v0 = vmul.f32 %v976_v22, %v972_v63  ;;  %v981_v2 = vmul.f32 %v977_v23, %v970_v61  ;;  %v2135_v22 = vld [vmem:[#allocation4 + $0x58] sm:$0xf0] }
 0x2db   : > { %v958_v6 = vpack.c.bf16 %v955_v60, %v954_v59  ;;  %v2138_v26 = vor.u32 %v2299_v21, %v2135_v22  ;;  %v2292_v60 = vld [vmem:[#allocation4 + $0x14] sm:$0xf0]  ;;  %v2103_v61 = vld [vmem:[#allocation4 + $0x18] sm:$0xf0] }
 0x2dc   : > { %v984_v7 = vpack.c.bf16 %v981_v2, %v980_v0  ;;  %v2296_v35 = vld [vmem:[#allocation4 + $0x34] sm:$0xf0]  ;;  %v2119_v36 = vld [vmem:[#allocation4 + $0x38] sm:$0xf0] }
 0x2dd   : > { %960 = vst [vmem:[#allocation4] sm:$0xff] %v958_v6  ;;  %v2302_v10 = vld [vmem:[#allocation4 + $0x64] sm:$0xf0]  ;;  %v2143_v11 = vld [vmem:[#allocation4 + $0x68] sm:$0xf0]  ;;  %v2118_v47 = vor.u32 %v2296_v35, %v2117_v39  ;;  %v2122_v48 = vor.u32 %v2295_v40, %v2119_v36 }
 0x2de   : > { %986 = vst [vmem:[#allocation4 + $0x10] sm:$0xff] %v984_v7  ;;  %v2142_v12 = vor.u32 %v2302_v10, %v2141_v37  ;;  %v2146_v14 = vor.u32 %v2301_v9, %v2143_v11  ;;  %v2077_v6 = vld [vmem:[%s3264_s5] sm:$0xf]  ;;  %v2286_v7 = vld [vmem:[%s3264_s5 + $0x4] sm:$0xf0] }
 0x2df   : > { %v943_v8 = vpop.permute.xlu0 %942  ;;  %v497_v41 = vpop.permute.xlu2 %496  ;;  %v2078_v16 = vor.u32 %v2286_v7, %v2077_v6 }
 0x2e0   : > { %1309 = vmatpush.bf16.msrb.mxu1 %v2142_v12  ;;  %1347 = vmatpush.bf16.msra.mxu3 %v2146_v14  ;;  %v995_v23 = vpop.permute.xlu1 %994  ;;  %v478_v14 = vld [vmem:[%s2541_s21 + $0x10] sm:$0xff] }
 0x2e1   : > { %v997_v24 = vsel %vm577_vm12, %v2849_v5, %v995_v23  ;;  %v999_v25 = vsel %vm577_vm12, %v995_v23, %v2849_v5  ;;  %v2130_v5 = vor.u32 %v2297_v31, %v2127_v28 }
 0x2e2   : > { %v1008_v44 = vmul.f32 %v1002_v17, %v999_v25  ;;  %v1009_v43 = vmul.f32 %v1003_v18, %v997_v24  ;;  %v2085_v25 = vld [vmem:[%s3264_s5 + $0x10] sm:$0xf] }
 0x2e4   : > { %v1011_v29 = vpack.c.bf16 %v1009_v43, %v1008_v44  ;;  %1310 = vmatpush.bf16.msrb.mxu1 %v2134_v45  ;;  %1348 = vmatpush.bf16.msra.mxu3 %v2138_v26  ;;  %v2093_v2 = vld [vmem:[#allocation4] sm:$0xf]  ;;  %v2289_v9 = vld [vmem:[#allocation4 + $0x4] sm:$0xf]  ;;  %v2288_v44 = vld [vmem:[%s3264_s5 + $0x14] sm:$0xf0] }
 0x2e5   : > { %v2101_v55 = vld [vmem:[#allocation4 + $0x10] sm:$0xf]  ;;  %v2086_v43 = vor.u32 %v2288_v44, %v2085_v25 }
 0x2e6   : > { %1013 = vst [vmem:[#allocation4 + $0x28] sm:$0xff] %v1011_v29  ;;  %v2102_v63 = vor.u32 %v2292_v60, %v2101_v55 }
 0x2e7   : > { %v483_v17 = vpop.permute.xlu0 %482 }
 0x2e8   : > { %v939_v38 = vpop.permute.xlu1 %938  ;;  %1311 = vmatpush.bf16.msrb.mxu1 %v2126_v34  ;;  %1349 = vmatpush.bf16.msra.mxu3 %v2130_v5  ;;  %v490_v13 = vsub.f32 %v476_v32, %v483_v17  ;;  %v491_v18 = vsub.f32 %v477_v33, %v483_v17 }
 0x2e9   : > { %v945_v42 = vsel %vm522_vm14, %v939_v38, %v943_v8  ;;  %v947_v46 = vsel %vm522_vm14, %v943_v8, %v939_v38 }
 0x2ea   : > { %v956_v49 = vmul.f32 %v950_v57, %v947_v46  ;;  %v957_v50 = vmul.f32 %v951_v3, %v945_v42  ;;  %v2995_v51 = vmul.f32 %v497_v41, %v490_v13  ;;  %v2997_v53 = vmul.f32 %v497_v41, %v491_v18  ;;  %v2291_v3 = vld [vmem:[#allocation4 + $0x14] sm:$0xf] }
 0x2eb   : > { %v2106_v0 = vor.u32 %v2291_v3, %v2103_v61 }
 0x2ec   : > { %v959_v56 = vpack.c.bf16 %v957_v50, %v956_v49  ;;  %1874 = vst [vmem:[%s2551_s29] sm:$0xff] %v2995_v51  ;;  %1312 = vmatpush.bf16.msrb.mxu1 %v2118_v47  ;;  %1350 = vmatpush.bf16.msra.mxu3 %v2122_v48 }
 0x2ed   : > { %1875 = vst [vmem:[%s2551_s29 + $0x8] sm:$0xff] %v2997_v53  ;;  %v2294_v4 = vld [vmem:[#allocation4 + $0x24] sm:$0xf0]  ;;  %v2111_v54 = vld [vmem:[#allocation4 + $0x28] sm:$0xf0] }
 0x2ee   : > { %961 = vst [vmem:[#allocation4 + $0x8] sm:$0xff] %v959_v56  ;;  %v2110_v57 = vor.u32 %v2294_v4, %v2109_v52  ;;  %v2114_v58 = vor.u32 %v2293_v1, %v2111_v54 }
 0x2ef   : > { %v502_v22 = vpop.permute.xlu0 %501 }
 0x2f0   : > { %v1177_v59 = vpop.permute.xlu1 %1176  ;;  %1313 = vmatpush.bf16.msrb.mxu1 %v2110_v57  ;;  %1351 = vmatpush.bf16.msra.mxu3 %v2114_v58 }
 0x2f4   : > { %1314 = vmatpush.bf16.msrb.mxu1 %v2102_v63  ;;  %1352 = vmatpush.bf16.msra.mxu3 %v2106_v0 }
 0x2f5   : > { %v2290_v37 = vld [vmem:[#allocation4 + $0x4] sm:$0xf0]  ;;  %v2095_v10 = vld [vmem:[#allocation4 + $0x8] sm:$0xf0] }
 0x2f6   : > { %v2094_v11 = vor.u32 %v2290_v37, %v2093_v2  ;;  %v2098_v12 = vor.u32 %v2289_v9, %v2095_v10 }
 0x2f8   : > { %1315 = vmatpush.bf16.msrb.mxu1 %v2094_v11  ;;  %1353 = vmatpush.bf16.msra.mxu3 %v2098_v12  ;;  %v488_v8 = vpop.permute.xlu1 %487 }
 0x2f9   : > { %v492_v20 = vsub.f32 %v478_v14, %v488_v8  ;;  %v493_v21 = vsub.f32 %v479_v15, %v488_v8 }
 0x2fb   : > { %v3011_v23 = vmul.f32 %v502_v22, %v492_v20  ;;  %v3013_v24 = vmul.f32 %v502_v22, %v493_v21  ;;  %1316 = vmatmul.bf16.vlgmr.msrb.gmra.mxu1 %v2078_v16  ;;  %1354 = vmatmul.bf16.vlgmr.msra.gmra.mxu3 %v2078_v16 }
 0x2fd   : > { %1876 = vst [vmem:[%s2551_s29 + $0x10] sm:$0xff] %v3011_v23 }
 0x2fe   : > { %1877 = vst [vmem:[%s2551_s29 + $0x18] sm:$0xff] %v3013_v24 }
 0x30b   : > { %1321 = vmatmul.bf16.gmra.mxu1 %v2086_v43  ;;  %1359 = vmatmul.bf16.gmra.mxu3 %v2086_v43 }
 0x337   : > { %v1187_v3 = vpop.permute.xlu1 %1186 }
 0x341   : > { %v1374_v32 = vpop.f32.mrf.mxu0 }
 0x347   : > { %v1336_v45 = vpop.f32.mrf.mxu3 }
 0x349   : > { %v1376_v42 = vpop.f32.mrf.mxu0 }
 0x34f   : > { %v1338_v26 = vpop.f32.mrf.mxu3 }
 0x357   : > { %v1341_v27 = vpop.f32.mrf.mxu3 }
 0x35f   : > { %v3025_v28 = vpop.f32.mrf.mxu3 }
 0x378   : > { %v1317_v29 = vpop.f32.mrf.mxu1 }
 0x379   : > { %v1318_v30 = vadd.f32 %v1317_v29, %v1177_v59 }
 0x37b   : > { %v1337_v31 = vadd.f32 %v1336_v45, %v1318_v30  ;;  %v1379_v45 = vpop.f32.mrf.mxu0 }
 0x37d   : > { %v2167_v33 = vmul.f32 -1.442695, %v1337_v31 }
 0x37e   : > { %v1355_v34 = vpop.f32.mrf.mxu3 }
 0x37f   : > { %2384 = vpow2.f32 %v2167_v33  ;;  %v1356_v5 = vadd.f32 %v1355_v34, %v1177_v59 }
 0x380   : > { %v1319_v35 = vpop.f32.mrf.mxu1 }
 0x381   : > { %v1320_v36 = vadd.f32 %v1319_v35, %v2973_v19  ;;  %v1375_v17 = vadd.f32 %v1374_v32, %v1356_v5 }
 0x383   : > { %v1339_v38 = vadd.f32 %v1338_v26, %v1320_v36  ;;  %v2168_v13 = vmul.f32 -1.442695, %v1375_v17  ;;  %v1192_v26 = vpop.permute.xlu2 %1191 }
 0x385   : > { %v2385_v18 = vpop.eup %2384  ;;  %v2169_v39 = vmul.f32 -1.442695, %v1339_v38  ;;  %2386 = vpow2.f32 %v2168_v13 }
 0x386   : > { %v1396_v40 = vadd.f32 1.0, %v2385_v18  ;;  %v1357_v41 = vpop.f32.mrf.mxu3 }
 0x387   : > { %2388 = vpow2.f32 %v2169_v39  ;;  %v1358_v46 = vadd.f32 %v1357_v41, %v2973_v19 }
 0x388   : > { %2390 = vrcp.f32 %v1396_v40  ;;  %v1322_v54 = vpop.f32.mrf.mxu1  ;;  %v1411_v58 = vand.u32 2147483648, %v1396_v40  ;;  %v1409_v19 = vand.u32 2147483647, %v1396_v40  ;;  %vm1405_vm2 = vweird.f32 %v1396_v40 }
 0x389   : > { %v1377_v47 = vadd.f32 %v1376_v42, %v1358_v46  ;;  %v1323_v61 = vadd.f32 %v1322_v54, %v1187_v3 }
 0x38a   : > { %v1412_v7 = vor.u32 1.1754944e-38, %v1411_v58  ;;  %vm1410_vm4 = vcmp.eq.f32.partialorder %v1409_v19, 8.507059e+37 }
 0x38b   : > { %v2387_v48 = vpop.eup %2386  ;;  %v2170_v49 = vmul.f32 -1.442695, %v1377_v47  ;;  %v1342_v12 = vadd.f32 %v1341_v27, %v1323_v61  ;;  %v1705_v61 = vld [vmem:[%s3267_s8 + $0x8] sm:$0xff] }
 0x38c   : > { %v1397_v50 = vadd.f32 1.0, %v2387_v48 }
 0x38d   : > { %v2389_v56 = vpop.eup %2388  ;;  %2392 = vpow2.f32 %v2170_v49 }
 0x38e   : > { %v2391_v52 = vpop.eup %2390  ;;  %v1398_v1 = vadd.f32 1.0, %v2389_v56  ;;  %2394 = vrcp.f32 %v1397_v50  ;;  %v1360_v37 = vpop.f32.mrf.mxu3  ;;  %v1424_v15 = vand.u32 2147483647, %v1397_v50  ;;  %v1426_v16 = vand.u32 2147483648, %v1397_v50 }
 0x38f   : > { %v1401_v4 = vmul.f32 %v2391_v52, %v1396_v40  ;;  %vm1406_vm1 = vweird.f32 %v2391_v52  ;;  %v1361_v25 = vadd.f32 %v1360_v37, %v1187_v3  ;;  %vm1420_vm6 = vweird.f32 %v1397_v50 }
 0x390   : > { %2396 = vrcp.f32 %v1398_v1  ;;  %vm1407_vm3 = vmor %vm1405_vm2, %vm1406_vm1  ;;  %v1324_v20 = vpop.f32.mrf.mxu1  ;;  %v1439_v44 = vand.u32 2147483647, %v1398_v1  ;;  %v1441_v43 = vand.u32 2147483648, %v1398_v1  ;;  %vm1435_vm1 = vweird.f32 %v1398_v1 }
 0x391   : > { %v1402_v57 = vsub.f32 1.0, %v1401_v4  ;;  %v1325_v32 = vadd.f32 %v1324_v20, %v1192_v26  ;;  %v1380_v17 = vadd.f32 %v1379_v45, %v1361_v25 }
 0x392   : > { %v1442_v36 = vor.u32 1.1754944e-38, %v1441_v43  ;;  %vm1440_vm0 = vcmp.eq.f32.partialorder %v1439_v44, 8.507059e+37 }
 0x393   : > { %v2393_v55 = vpop.eup %2392  ;;  %v1403_v59 = vmul.f32 %v2391_v52, %v1402_v57  ;;  %v1344_v40 = vadd.f32 %v3025_v28, %v1325_v32 }
 0x394   : > { %v2395_v60 = vpop.eup %2394  ;;  %v3029_v63 = vadd.f32 1.0, %v2393_v55 }
 0x395   : > { %v1416_v0 = vmul.f32 %v2395_v60, %v1397_v50  ;;  %v1404_v2 = vadd.f32 %v2391_v52, %v1403_v59  ;;  %vm1421_vm5 = vweird.f32 %v2395_v60 }
 0x396   : > { %v2397_v6 = vpop.eup %2396  ;;  %2398 = vrcp.f32 %v3029_v63  ;;  %vm1422_vm2 = vmor %vm1420_vm6, %vm1421_vm5  ;;  %v1362_v42 = vpop.f32.mrf.mxu3  ;;  %v1454_v46 = vand.u32 2147483647, %v3029_v63  ;;  %v1456_v47 = vand.u32 2147483648, %v3029_v63  ;;  %vm1450_vm6 = vweird.f32 %v3029_v63 }
 0x397   : > { %v1431_v9 = vmul.f32 %v2397_v6, %v1398_v1  ;;  %v1408_v10 = vsel %vm1407_vm3, %v2391_v52, %v1404_v2  ;;  %v1417_v11 = vsub.f32 1.0, %v1416_v0  ;;  %vm1436_vm7 = vweird.f32 %v2397_v6  ;;  %v1381_v1 = vpop.f32.mrf.mxu0 }
 0x398   : > { %v1413_v14 = vsel %vm1410_vm4, %v1412_v7, %v1408_v10  ;;  %vm1425_vm3 = vcmp.eq.f32.partialorder %v1424_v15, 8.507059e+37  ;;  %vm1437_vm4 = vmor %vm1435_vm1, %vm1436_vm7  ;;  %v1363_v52 = vadd.f32 %v1362_v42, %v1192_v26  ;;  %v1457_v4 = vor.u32 1.1754944e-38, %v1456_v47 }
 0x399   : > { %v1460_v8 = vmul.f32 %v1413_v14, %v2995_v51  ;;  %v1432_v21 = vsub.f32 1.0, %v1431_v9  ;;  %v1418_v22 = vmul.f32 %v2395_v60, %v1417_v11  ;;  %v1427_v51 = vor.u32 1.1754944e-38, %v1426_v16 }
 0x39a   : > { %vm1455_vm7 = vcmp.eq.f32.partialorder %v1454_v46, 8.507059e+37 }
 0x39b   : > { %v1464_v29 = vadd.f32 %v1460_v8, %v1342_v12  ;;  %v1433_v30 = vmul.f32 %v2397_v6, %v1432_v21  ;;  %v1419_v31 = vadd.f32 %v2395_v60, %v1418_v22  ;;  %v3112_v8 = vld [vmem:[%s3261_s2 + $0x3] ss:$8 sm:$0x3] }
 0x39c   : > { %v2399_v27 = vpop.eup %2398  ;;  %v1564_v21 = vperm.slane %v3112_v8, 0  ;;  %v1565_v22 = vperm.slane %v3112_v8, 1 }
 0x39d   : > { %v3033_v33 = vmax.f32 %v1464_v29, 0.0  ;;  %v1446_v34 = vmul.f32 %v2399_v27, %v3029_v63  ;;  %v1434_v5 = vadd.f32 %v2397_v6, %v1433_v30  ;;  %v1423_v35 = vsel %vm1422_vm2, %v2395_v60, %v1419_v31  ;;  %v2174_v31 = vld [vmem:[%s3261_s2 + $0x5] ss:$8 sm:$0x3] }
 0x39e   : > { %v1428_v38 = vsel %vm1425_vm3, %v1427_v51, %v1423_v35  ;;  %vm1451_vm5 = vweird.f32 %v2399_v27  ;;  %v1594_v32 = vperm.slane %v2174_v31, 0  ;;  %v1595_v51 = vperm.slane %v2174_v31, 1 }
 0x39f   : > { %v1438_v13 = vsel %vm1437_vm4, %v2397_v6, %v1434_v5  ;;  %v1461_v18 = vmul.f32 %v1428_v38, %v2997_v53  ;;  %v1447_v39 = vsub.f32 1.0, %v1446_v34  ;;  %1580 = vrot.lane.b32.xlu2 %v3033_v33, %s2443_s10  ;;  %1606 = vrot.lane.b32.xlu1 %v3033_v33, %s2442_s16  ;;  %v3097_v6 = vld [vmem:[%s3261_s2 + $0x7] ss:$8 sm:$0x3] }
 0x3a0   : > { %v1443_v41 = vsel %vm1440_vm0, %v1442_v36, %v1438_v13  ;;  %1632 = vrot.lane.b32.xlu0 %v3033_v33, %s2441_s30  ;;  %vm1452_vm0 = vmor %vm1450_vm6, %vm1451_vm5  ;;  %v1646_v7 = vperm.slane %v3097_v6, 0  ;;  %v1647_v37 = vperm.slane %v3097_v6, 1  ;;  %v2175_v13 = vld [vmem:[%s3261_s2 + $0x6] ss:$8 sm:$0x3] }
 0x3a1   : > { %v1462_v53 = vmul.f32 %v1443_v41, %v3011_v23  ;;  %v1465_v48 = vadd.f32 %v1461_v18, %v1380_v17  ;;  %v1448_v49 = vmul.f32 %v2399_v27, %v1447_v39  ;;  %v1382_v23 = vadd.f32 %v1381_v1, %v1363_v52 }
 0x3a2   : > { %v1620_v39 = vperm.slane %v2175_v13, 0 }
 0x3a3   : > { %v1466_v50 = vadd.f32 %v1462_v53, %v1344_v40  ;;  %v1469_v56 = vmax.f32 %v1465_v48, 0.0  ;;  %v1449_v28 = vadd.f32 %v2399_v27, %v1448_v49  ;;  %v1621_v40 = vperm.slane %v2175_v13, 1  ;;  %v3143_v49 = vld [vmem:[%s3261_s2 + $0x2] ss:$8 sm:$0x3] }
 0x3a4   : > { %v1539_v52 = vperm.slane %v3143_v49, 1 }
 0x3a5   : > { %v1470_v54 = vmax.f32 %v1466_v50, 0.0  ;;  %v1576_v57 = vpack.c.bf16 %v1469_v56, %v3033_v33  ;;  %v1453_v58 = vsel %vm1452_vm0, %v2399_v27, %v1449_v28 }
 0x3a6   : > { %v1458_v55 = vsel %vm1455_vm7, %v1457_v4, %v1453_v58 }
 0x3a7   : > { %1578 = vst [vmem:[#allocation4 + $0x40] sm:$0xff] %v1576_v57  ;;  %v1463_v3 = vmul.f32 %v1458_v55, %v3013_v24  ;;  %1524 = vrot.lane.b32.xlu1 %v3033_v33, %s2445_s18  ;;  %1608 = vrot.lane.b32.xlu2 %v1470_v54, %s2442_s16  ;;  %v1704_v24 = vld [vmem:[%s3267_s8] sm:$0xff] }
 0x3a8   : > { %1550 = vrot.lane.b32.xlu0 %v3033_v33, %s2444_s17 }
 0x3a9   : > { %v1467_v59 = vadd.f32 %v1463_v3, %v1382_v23 }
 0x3ab   : > { %v1471_v19 = vmax.f32 %v1467_v59, 0.0 }
 0x3ad   : > { %v1577_v60 = vpack.c.bf16 %v1471_v19, %v1470_v54 }
 0x3af   : > { %1579 = vst [vmem:[#allocation4 + $0x48] sm:$0xff] %v1577_v60  ;;  %1526 = vrot.lane.b32.xlu2 %v1470_v54, %s2445_s18  ;;  %1634 = vrot.lane.b32.xlu1 %v1470_v54, %s2441_s30 }
 0x3b0   : > { %1582 = vrot.lane.b32.xlu0 %v1470_v54, %s2443_s10 }
 0x3b7   : > { %1636 = vrot.lane.b32.xlu2 %v1469_v56, %s2441_s30  ;;  %1552 = vrot.lane.b32.xlu1 %v1470_v54, %s2444_s17 }
 0x3b8   : > { %1610 = vrot.lane.b32.xlu0 %v1469_v56, %s2442_s16 }
 0x3bf   : > { %1554 = vrot.lane.b32.xlu2 %v1469_v56, %s2444_s17  ;;  %1584 = vrot.lane.b32.xlu1 %v1469_v56, %s2443_s10 }
 0x3c0   : > { %1528 = vrot.lane.b32.xlu0 %v1469_v56, %s2445_s18 }
 0x3c7   : > { %1586 = vrot.lane.b32.xlu2 %v1471_v19, %s2443_s10  ;;  %1612 = vrot.lane.b32.xlu1 %v1471_v19, %s2442_s16 }
 0x3c8   : > { %1638 = vrot.lane.b32.xlu0 %v1471_v19, %s2441_s30 }
 0x3cf   : > { %1498 = vrot.lane.b32.xlu2 %v3033_v33, %s2446_s19  ;;  %1502 = vrot.lane.b32.xlu1 %v1469_v56, %s2446_s19 }
 0x3d0   : > { %1500 = vrot.lane.b32.xlu0 %v1470_v54, %s2446_s19 }
 0x3d7   : > { %1504 = vrot.lane.b32.xlu2 %v1471_v19, %s2446_s19  ;;  %1530 = vrot.lane.b32.xlu1 %v1471_v19, %s2445_s18 }
 0x3d8   : > { %1556 = vrot.lane.b32.xlu0 %v1471_v19, %s2444_s17 }
 0x3df   : > { %1476 = vrot.lane.b32.xlu2 %v1469_v56, %s2447_s20  ;;  %1474 = vrot.lane.b32.xlu1 %v1470_v54, %s2447_s20 }
 0x3e0   : > { %1472 = vrot.lane.b32.xlu0 %v3033_v33, %s2447_s20 }
 0x3e7   : > { %1660 = vrot.lane.b32.xlu2 %v1470_v54, %s2448_s22  ;;  %1658 = vrot.lane.b32.xlu1 %v3033_v33, %s2448_s22 }
 0x3e8   : > { %1478 = vrot.lane.b32.xlu0 %v1471_v19, %s2447_s20 }
 0x3ef   : > { %1708 = vperm.xlu2 %2381, %v1704_v24   ;;  %1664 = vrot.lane.b32.xlu1 %v1471_v19, %s2448_s22 }
 0x3f0   : > { %1662 = vrot.lane.b32.xlu0 %v1469_v56, %s2448_s22  ;;  %v1538_v56 = vperm.slane %v3143_v49, 0  ;;  %v1484_v49 = vld [vmem:[%s3261_s2] ss:$8 sm:$0x3] }
 0x3f1   : > { %v1486_v8 = vperm.slane %v1484_v49, 0 }
 0x3f8   : > { %1713 = vperm.xlu0 %2382, %v1705_v61  }
 0x3f9   : > { %v1581_v63 = vpop.permute.xlu2 %1580 }
 0x401   : > { %v3090_v0 = vpop.permute.xlu2 %1608 }
 0x409   : > { %v3092_v2 = vpop.permute.xlu2 %1526 }
 0x411   : > { %v1607_v9 = vpop.permute.xlu1 %1606  ;;  %v1637_v10 = vpop.permute.xlu2 %1636 }
 0x412   : > { %v1633_v11 = vpop.permute.xlu0 %1632 }
 0x413   : > { %v1640_v12 = vsel %vm693_vm8, %v1633_v11, %v1637_v10  ;;  %v1642_v14 = vsel %vm693_vm8, %v1637_v10, %v1633_v11 }
 0x414   : > { %v1650_v15 = vmul.f32 %v1646_v7, %v1640_v12  ;;  %v1651_v16 = vmul.f32 %v1647_v37, %v1642_v14 }
 0x416   : > { %v1654_v20 = vpack.c.bf16 %v1651_v16, %v1650_v15 }
 0x418   : > { %1656 = vst [vmem:[#allocation4 + $0x70] sm:$0xff] %v1654_v20 }
 0x419   : > { %v1525_v25 = vpop.permute.xlu1 %1524  ;;  %v1555_v44 = vpop.permute.xlu2 %1554 }
 0x41a   : > { %v1551_v43 = vpop.permute.xlu0 %1550 }
 0x41b   : > { %v1558_v45 = vsel %vm605_vm11, %v1551_v43, %v1555_v44  ;;  %v1560_v26 = vsel %vm605_vm11, %v1555_v44, %v1551_v43 }
 0x41c   : > { %v1568_v29 = vmul.f32 %v1564_v21, %v1560_v26  ;;  %v1569_v30 = vmul.f32 %v1565_v22, %v1558_v45 }
 0x41e   : > { %v1572_v27 = vpack.c.bf16 %v1569_v30, %v1568_v29 }
 0x420   : > { %1574 = vst [vmem:[#allocation4 + $0x30] sm:$0xff] %v1572_v27 }
 0x421   : > { %v1587_v33 = vpop.permute.xlu2 %1586  ;;  %v1635_v34 = vpop.permute.xlu1 %1634 }
 0x422   : > { %v1583_v5 = vpop.permute.xlu0 %1582 }
 0x423   : > { %v1589_v35 = vsel %vm637_vm10, %v1583_v5, %v1587_v33  ;;  %v1591_v36 = vsel %vm637_vm10, %v1587_v33, %v1583_v5 }
 0x424   : > { %v1600_v17 = vmul.f32 %v1594_v32, %v1589_v35  ;;  %v1601_v38 = vmul.f32 %v1595_v51, %v1591_v36  ;;  %v2244_v35 = vld [vmem:[#allocation4 + $0x70] sm:$0xf]  ;;  %v2323_v36 = vld [vmem:[#allocation4 + $0x74] sm:$0xf] }
 0x426   : > { %v1603_v18 = vpack.c.bf16 %v1601_v38, %v1600_v17 }
 0x428   : > { %1605 = vst [vmem:[#allocation4 + $0x58] sm:$0xff] %v1603_v18 }
 0x429   : > { %v3134_v41 = vpop.permute.xlu1 %1552  ;;  %v1499_v24 = vpop.permute.xlu2 %1498 }
 0x42a   : > { %v1611_v42 = vpop.permute.xlu0 %1610 }
 0x42b   : > { %v1614_v46 = vsel %vm665_vm9, %v1607_v9, %v1611_v42  ;;  %v1616_v47 = vsel %vm665_vm9, %v1611_v42, %v1607_v9 }
 0x42c   : > { %v1624_v53 = vmul.f32 %v1620_v39, %v1614_v46  ;;  %v1625_v48 = vmul.f32 %v1621_v40, %v1616_v47 }
 0x42e   : > { %v1628_v50 = vpack.c.bf16 %v1625_v48, %v1624_v53 }
 0x430   : > { %1630 = vst [vmem:[#allocation4 + $0x60] sm:$0xff] %v1628_v50 }
 0x431   : > { %v1585_v28 = vpop.permute.xlu1 %1584  ;;  %v1505_v29 = vpop.permute.xlu2 %1504 }
 0x432   : > { %v1588_v1 = vsel %vm637_vm10, %v1581_v63, %v1585_v28  ;;  %v1590_v4 = vsel %vm637_vm10, %v1585_v28, %v1581_v63  ;;  %v1529_v54 = vpop.permute.xlu0 %1528 }
 0x433   : > { %v1598_v57 = vmul.f32 %v1594_v32, %v1588_v1  ;;  %v1599_v58 = vmul.f32 %v1595_v51, %v1590_v4  ;;  %v1532_v55 = vsel %vm577_vm12, %v1525_v25, %v1529_v54  ;;  %v1534_v23 = vsel %vm577_vm12, %v1529_v54, %v1525_v25  ;;  %v2171_v25 = vld [vmem:[%s3261_s2 + $0x1] ss:$8 sm:$0x3] }
 0x434   : > { %v1542_v3 = vmul.f32 %v1538_v56, %v1534_v23  ;;  %v1543_v59 = vmul.f32 %v1539_v52, %v1532_v55  ;;  %v1512_v43 = vperm.slane %v2171_v25, 0  ;;  %v1513_v45 = vperm.slane %v2171_v25, 1 }
 0x435   : > { %v1602_v19 = vpack.c.bf16 %v1599_v58, %v1598_v57 }
 0x436   : > { %v1546_v60 = vpack.c.bf16 %v1543_v59, %v1542_v3  ;;  %v2230_v59 = vld [vmem:[#allocation4 + $0x58] sm:$0xf0] }
 0x437   : > { %1604 = vst [vmem:[#allocation4 + $0x50] sm:$0xff] %v1602_v19  ;;  %v2236_v4 = vld [vmem:[#allocation4 + $0x60] sm:$0xf]  ;;  %v2321_v54 = vld [vmem:[#allocation4 + $0x64] sm:$0xf] }
 0x438   : > { %1548 = vst [vmem:[#allocation4 + $0x20] sm:$0xff] %v1546_v60 }
 0x439   : > { %v1613_v61 = vpop.permute.xlu1 %1612 }
 0x43a   : > { %v1615_v63 = vsel %vm665_vm9, %v3090_v0, %v1613_v61  ;;  %v1617_v9 = vsel %vm665_vm9, %v1613_v61, %v3090_v0  ;;  %v1639_v10 = vpop.permute.xlu0 %1638  ;;  %v2222_v61 = vld [vmem:[#allocation4 + $0x48] sm:$0xf0] }
 0x43b   : > { %v1626_v11 = vmul.f32 %v1620_v39, %v1615_v63  ;;  %v1627_v12 = vmul.f32 %v1621_v40, %v1617_v9  ;;  %v1641_v14 = vsel %vm693_vm8, %v1635_v34, %v1639_v10  ;;  %v1643_v15 = vsel %vm693_vm8, %v1639_v10, %v1635_v34  ;;  %v1477_v63 = vpop.permute.xlu2 %1476 }
 0x43c   : > { %v1652_v16 = vmul.f32 %v1646_v7, %v1641_v14  ;;  %v1653_v20 = vmul.f32 %v1647_v37, %v1643_v15  ;;  %v2317_v14 = vld [vmem:[#allocation4 + $0x44] sm:$0xf]  ;;  %vm3270_vm8 = vcmask 130048  }
 0x43d   : > { %v1629_v0 = vpack.c.bf16 %v1627_v12, %v1626_v11  ;;  %v2220_v12 = vld [vmem:[#allocation4 + $0x40] sm:$0xf]  ;;  %v2225_v25 = vor.u32 %v2317_v14, %v2222_v61  ;;  %vm3271_vm9 = vmmov %vm3270_vm8 }
 0x43e   : > { %v1655_v44 = vpack.c.bf16 %v1653_v20, %v1652_v16  ;;  %v2228_v55 = vld [vmem:[#allocation4 + $0x50] sm:$0xf]  ;;  %v2319_v23 = vld [vmem:[#allocation4 + $0x54] sm:$0xf] }
 0x43f   : > { %1631 = vst [vmem:[#allocation4 + $0x68] sm:$0xff] %v1629_v0  ;;  %v2233_v19 = vor.u32 %v2319_v23, %v2230_v59  ;;  %v2308_v59 = vld [vmem:[%s3266_s7 + $0x4] sm:$0xf0] }
 0x440   : > { %1657 = vst [vmem:[#allocation4 + $0x78] sm:$0xff] %v1655_v44  ;;  %v2212_v44 = vld [vmem:[#allocation4 + $0x30] sm:$0xf] }
 0x441   : > { %v1503_v26 = vpop.permute.xlu1 %1502 }
 0x442   : > { %v1506_v30 = vsel %vm549_vm13, %v1499_v24, %v1503_v26  ;;  %v1508_v7 = vsel %vm549_vm13, %v1503_v26, %v1499_v24  ;;  %v1501_v6 = vpop.permute.xlu0 %1500  ;;  %v2318_v24 = vld [vmem:[#allocation4 + $0x44] sm:$0xf0] }
 0x443   : > { %v1516_v37 = vmul.f32 %v1512_v43, %v1508_v7  ;;  %v1517_v31 = vmul.f32 %v1513_v45, %v1506_v30  ;;  %v1507_v27 = vsel %vm549_vm13, %v1501_v6, %v1505_v29  ;;  %v1509_v32 = vsel %vm549_vm13, %v1505_v29, %v1501_v6 }
 0x444   : > { %v1518_v51 = vmul.f32 %v1512_v43, %v1509_v32  ;;  %v1519_v33 = vmul.f32 %v1513_v45, %v1507_v27  ;;  %v2221_v20 = vor.u32 %v2318_v24, %v2220_v12  ;;  %v2315_v45 = vld [vmem:[#allocation4 + $0x34] sm:$0xf] }
 0x445   : > { %v1520_v34 = vpack.c.bf16 %v1517_v31, %v1516_v37 }
 0x446   : > { %v1521_v5 = vpack.c.bf16 %v1519_v33, %v1518_v51  ;;  %v2322_v40 = vld [vmem:[#allocation4 + $0x64] sm:$0xf0]  ;;  %v2238_v42 = vld [vmem:[#allocation4 + $0x68] sm:$0xf0]  ;;  %v2204_v51 = vld [vmem:[#allocation4 + $0x20] sm:$0xf] }
 0x447   : > { %1522 = vst [vmem:[#allocation4 + $0x10] sm:$0xff] %v1520_v34  ;;  %v2324_v17 = vld [vmem:[#allocation4 + $0x74] sm:$0xf0]  ;;  %v2246_v38 = vld [vmem:[#allocation4 + $0x78] sm:$0xf0]  ;;  %v2241_v58 = vor.u32 %v2321_v54, %v2238_v42 }
 0x448   : > { %1523 = vst [vmem:[#allocation4 + $0x18] sm:$0xff] %v1521_v5  ;;  %v2245_v13 = vor.u32 %v2324_v17, %v2244_v35  ;;  %v2249_v18 = vor.u32 %v2323_v36, %v2246_v38  ;;  %v2313_v33 = vld [vmem:[#allocation4 + $0x24] sm:$0xf]  ;;  %v2177_v17 = vld [vmem:[%s3261_s2 + $0x10] ss:$8 sm:$0x3] }
 0x449   : > { %v1531_v39 = vpop.permute.xlu1 %1530  ;;  %v1672_v42 = vperm.slane %v2177_v17, 0 }
 0x44a   : > { %v1533_v46 = vsel %vm577_vm12, %v3092_v2, %v1531_v39  ;;  %v1535_v47 = vsel %vm577_vm12, %v1531_v39, %v3092_v2  ;;  %1818 = vmatpush.bf16.msrb.mxu2 %v2245_v13  ;;  %1846 = vmatpush.bf16.msra.mxu0 %v2249_v18  ;;  %v1557_v53 = vpop.permute.xlu0 %1556 }
 0x44b   : > { %v1544_v48 = vmul.f32 %v1538_v56, %v1535_v47  ;;  %v1545_v50 = vmul.f32 %v1539_v52, %v1533_v46  ;;  %v1559_v28 = vsel %vm605_vm11, %v3134_v41, %v1557_v53  ;;  %v1561_v1 = vsel %vm605_vm11, %v1557_v53, %v3134_v41  ;;  %v2320_v41 = vld [vmem:[#allocation4 + $0x54] sm:$0xf0] }
 0x44c   : > { %v1570_v2 = vmul.f32 %v1564_v21, %v1561_v1  ;;  %v1571_v57 = vmul.f32 %v1565_v22, %v1559_v28  ;;  %v2237_v56 = vor.u32 %v2322_v40, %v2236_v4  ;;  %v2229_v21 = vor.u32 %v2320_v41, %v2228_v55  ;;  %v2180_v55 = vld [vmem:[%s3266_s7] sm:$0xf] }
 0x44d   : > { %v1547_v52 = vpack.c.bf16 %v1545_v50, %v1544_v48  ;;  %v1487_v22 = vperm.slane %v1484_v49, 1  ;;  %v1673_v46 = vperm.slane %v2177_v17, 1  ;;  %v1661_v48 = vpop.permute.xlu2 %1660 }
 0x44e   : > { %v1573_v3 = vpack.c.bf16 %v1571_v57, %v1570_v2  ;;  %1819 = vmatpush.bf16.msrb.mxu2 %v2237_v56  ;;  %1847 = vmatpush.bf16.msra.mxu0 %v2241_v58  ;;  %v2196_v38 = vld [vmem:[#allocation4 + $0x10] sm:$0xf]  ;;  %v2311_v18 = vld [vmem:[#allocation4 + $0x14] sm:$0xf] }
 0x44f   : > { %1549 = vst [vmem:[#allocation4 + $0x28] sm:$0xff] %v1547_v52  ;;  %v2312_v13 = vld [vmem:[#allocation4 + $0x14] sm:$0xf0]  ;;  %v2198_v39 = vld [vmem:[#allocation4 + $0x18] sm:$0xf0] }
 0x450   : > { %1575 = vst [vmem:[#allocation4 + $0x38] sm:$0xff] %v1573_v3  ;;  %v2197_v47 = vor.u32 %v2312_v13, %v2196_v38  ;;  %v2201_v53 = vor.u32 %v2311_v18, %v2198_v39 }
 0x451   : > { %v1475_v60 = vpop.permute.xlu1 %1474 }
 0x452   : > { %1820 = vmatpush.bf16.msrb.mxu2 %v2229_v21  ;;  %1848 = vmatpush.bf16.msra.mxu0 %v2233_v19  ;;  %v1473_v9 = vpop.permute.xlu0 %1472 }
 0x453   : > { %v1480_v10 = vsel %vm522_vm14, %v1473_v9, %v1477_v63  ;;  %v1482_v11 = vsel %vm522_vm14, %v1477_v63, %v1473_v9  ;;  %v2182_v63 = vld [vmem:[%s3266_s7 + $0x8] sm:$0xf0] }
 0x454   : > { %v1490_v15 = vmul.f32 %v1486_v8, %v1482_v11  ;;  %v1491_v16 = vmul.f32 %v1487_v22, %v1480_v10 }
 0x456   : > { %v1494_v0 = vpack.c.bf16 %v1491_v16, %v1490_v15  ;;  %1821 = vmatpush.bf16.msrb.mxu2 %v2221_v20  ;;  %1849 = vmatpush.bf16.msra.mxu0 %v2225_v25  ;;  %v2314_v6 = vld [vmem:[#allocation4 + $0x24] sm:$0xf0]  ;;  %v2206_v37 = vld [vmem:[#allocation4 + $0x28] sm:$0xf0]  ;;  %v1709_v15 = vpop.permute.xlu2 %1708 }
 0x457   : > { %v2316_v43 = vld [vmem:[#allocation4 + $0x34] sm:$0xf0]  ;;  %v2214_v26 = vld [vmem:[#allocation4 + $0x38] sm:$0xf0]  ;;  %v2205_v35 = vor.u32 %v2314_v6, %v2204_v51  ;;  %v2209_v36 = vor.u32 %v2313_v33, %v2206_v37 }
 0x458   : > { %1496 = vst [vmem:[#allocation4] sm:$0xff] %v1494_v0  ;;  %v2213_v29 = vor.u32 %v2316_v43, %v2212_v44  ;;  %v2217_v30 = vor.u32 %v2315_v45, %v2214_v26 }
 0x459   : > { %v1659_v7 = vpop.permute.xlu1 %1658 }
 0x45a   : > { %1822 = vmatpush.bf16.msrb.mxu2 %v2213_v29  ;;  %1850 = vmatpush.bf16.msra.mxu0 %v2217_v30  ;;  %v1479_v31 = vpop.permute.xlu0 %1478 }
 0x45b   : > { %v1481_v27 = vsel %vm522_vm14, %v1475_v60, %v1479_v31  ;;  %v1483_v32 = vsel %vm522_vm14, %v1479_v31, %v1475_v60  ;;  %v2307_v60 = vld [vmem:[%s3266_s7 + $0x4] sm:$0xf] }
 0x45c   : > { %v1492_v34 = vmul.f32 %v1486_v8, %v1483_v32  ;;  %v1493_v5 = vmul.f32 %v1487_v22, %v1481_v27  ;;  %v2181_v22 = vor.u32 %v2308_v59, %v2180_v55  ;;  %v2185_v14 = vor.u32 %v2307_v60, %v2182_v63 }
 0x45e   : > { %v1495_v40 = vpack.c.bf16 %v1493_v5, %v1492_v34  ;;  %1823 = vmatpush.bf16.msrb.mxu2 %v2205_v35  ;;  %1851 = vmatpush.bf16.msra.mxu0 %v2209_v36 }
 0x45f   : > { %v2188_v3 = vld [vmem:[#allocation4] sm:$0xf]  ;;  %v2309_v41 = vld [vmem:[#allocation4 + $0x4] sm:$0xf] }
 0x460   : > { %1497 = vst [vmem:[#allocation4 + $0x8] sm:$0xff] %v1495_v40 }
 0x461   : > { %v1665_v50 = vpop.permute.xlu1 %1664 }
 0x462   : > { %v1667_v28 = vsel %vm721_vm15, %v1661_v48, %v1665_v50  ;;  %v1669_v1 = vsel %vm721_vm15, %v1665_v50, %v1661_v48  ;;  %1824 = vmatpush.bf16.msrb.mxu2 %v2197_v47  ;;  %1852 = vmatpush.bf16.msra.mxu0 %v2201_v53  ;;  %v1663_v4 = vpop.permute.xlu0 %1662 }
 0x463   : > { %v1678_v54 = vmul.f32 %v1672_v42, %v1667_v28  ;;  %v1679_v2 = vmul.f32 %v1673_v46, %v1669_v1  ;;  %v1666_v57 = vsel %vm721_vm15, %v1659_v7, %v1663_v4  ;;  %v1668_v56 = vsel %vm721_vm15, %v1663_v4, %v1659_v7 }
 0x464   : > { %v1676_v58 = vmul.f32 %v1672_v42, %v1666_v57  ;;  %v1677_v49 = vmul.f32 %v1673_v46, %v1668_v56 }
 0x465   : > { %v1681_v52 = vpack.c.bf16 %v1679_v2, %v1678_v54 }
 0x466   : > { %v1680_v23 = vpack.c.bf16 %v1677_v49, %v1676_v58 }
 0x467   : > { %1683 = vst [vmem:[#allocation4 + $0x88] sm:$0xff] %v1681_v52  ;;  %v2310_v21 = vld [vmem:[#allocation4 + $0x4] sm:$0xf0]  ;;  %v2190_v19 = vld [vmem:[#allocation4 + $0x8] sm:$0xf0] }
 0x468   : > { %1682 = vst [vmem:[#allocation4 + $0x80] sm:$0xff] %v1680_v23  ;;  %v2189_v62 = vor.u32 %v2310_v21, %v2188_v3  ;;  %v2193_v8 = vor.u32 %v2309_v41, %v2190_v19 }
 0x46a   : > { %1825 = vmatpush.bf16.msrb.mxu2 %v2189_v62  ;;  %1853 = vmatpush.bf16.msra.mxu0 %v2193_v8  ;;  %v1714_v44 = vpop.permute.xlu0 %1713 }
 0x46d   : > { %1826 = vmatmul.bf16.vlgmr.msrb.gmra.mxu2 %v2181_v22  ;;  %1854 = vmatmul.bf16.vlgmr.msra.gmra.mxu0 %v2181_v22 }
 0x46e   : > { %v2326_v24 = vld [vmem:[#allocation4 + $0x84] sm:$0xf0]  ;;  %v2254_v61 = vld [vmem:[#allocation4 + $0x88] sm:$0xf0] }
 0x46f   : > { %v2252_v9 = vld [vmem:[#allocation4 + $0x80] sm:$0xf]  ;;  %v2325_v10 = vld [vmem:[#allocation4 + $0x84] sm:$0xf] }
 0x470   : > { %v2253_v11 = vor.u32 %v2326_v24, %v2252_v9  ;;  %v2257_v12 = vor.u32 %v2325_v10, %v2254_v61 }
 0x472   : > { %1839 = vmatpush.bf16.msra.mxu1 %v2253_v11  ;;  %1867 = vmatpush.bf16.msra.mxu2 %v2257_v12 }
 0x475   : > { %2258 = vmatmul.msk.bf16.vlgmr.msra.gmra.mxu1 %vm3270_vm8, %v2185_v14 }
 0x47d   : > { %2259 = vmatmul.msk.bf16.vlgmr.msra.gmra.mxu2 %vm3271_vm9, %v2185_v14 }
 0x4ea   : > { %v1855_v26 = vpop.f32.mrf.mxu0 }
 0x4eb   : > { %v1856_v7 = vadd.f32 %v1855_v26, %v1709_v15 }
 0x4f0   : > { %v1827_v16 = vpop.f32.mrf.mxu2 }
 0x4f1   : > { %v1828_v20 = vadd.f32 %v1827_v16, %v1709_v15 }
 0x4f2   : > { %v1841_v25 = vpop.f32.mrf.mxu1  ;;  %v1857_v31 = vpop.f32.mrf.mxu0 }
 0x4f3   : > { %v1842_v0 = vadd.f32 %v1841_v25, %v1828_v20  ;;  %v1858_v27 = vadd.f32 %v1857_v31, %v1714_v44 }
 0x4f5   : > { %1878 = vst [vmem:[%s2551_s29 + $0x20] sm:$0xff] %v1842_v0 }
 0x4f8   : > { %v1829_v43 = vpop.f32.mrf.mxu2 }
 0x4f9   : > { %v1830_v45 = vadd.f32 %v1829_v43, %v1714_v44 }
 0x4fa   : > { %v1843_v29 = vpop.f32.mrf.mxu1 }
 0x4fb   : > { %v1844_v30 = vadd.f32 %v1843_v29, %v1830_v45 }
 0x4fd   : > { %1880 = vst [vmem:[%s2551_s29 + $0x30] sm:$0xff] %v1844_v30 }
 0x500   : > { %v1869_v6 = vpop.f32.mrf.mxu2 }
 0x501   : > { %v1870_v37 = vadd.f32 %v1869_v6, %v1856_v7 }
 0x503   : > { %1879 = vst [vmem:[%s2551_s29 + $0x28] sm:$0xff] %v1870_v37 }
 0x508   : > { %v1871_v32 = vpop.f32.mrf.mxu2 }
 0x509   : > { %v1872_v51 = vadd.f32 %v1871_v32, %v1858_v27 }
 0x50b   : > { %1881 = vst [vmem:[%s2551_s29 + $0x38] sm:$0xff] %v1872_v51 }
 0x50c PF: > { %s19_s13 = sadd.s32 1, %s2438_s13   ;;  %s3272_s30 = smov %s2430_s11 }
 0x50d   : > { %p16_p11 = scmp.ge.s32.totalorder %s19_s13, 6   ;;  %s3273_s10 = smov %s2434_s12 }
 0x50e   : > { %s3274_s11 = smov %s3277_s14  ;;  %s3275_s12 = smov %s3281_s15 }
 0x50f   :  { %18 = sbr.rel (!%p16_p11) target bundleno = 3 (0x3), region = 112 }

</bundles_post_ra>
